<compile_context>
chip_gen: v5e
topology: v5e:2x2
jax: 0.10.0
libtpu: 0.0.40
codegen_flags: <defaults>
</compile_context>

<pallas_src>
import functools
import math

import jax
import jax.numpy as jnp
from jax.experimental import pallas as pl
from jax.experimental.pallas import tpu as pltpu


# ----------------------------------------------------------------------------
# VMEM-aware tile sizing
# ----------------------------------------------------------------------------

def _tpu_vmem_bytes():
    try:
        return int(pltpu.get_tpu_info().vmem_capacity_bytes)
    except Exception:
        return 64 * 1024 * 1024          # conservative (v7x-sized) fallback


def _vmem_limit_bytes():
    return int(_tpu_vmem_bytes() * 0.6)


def _pick_tile_h(H, W, f32_per_row):
    """Largest divisor of H whose per-tile working set stays well inside VMEM."""
    budget = _tpu_vmem_bytes() // 4      # headroom for double-buffering + compiler scratch
    max_rows = max(1, budget // max(1, 4 * W * f32_per_row))
    th = 1
    for d in range(1, H + 1):
        if H % d == 0 and d <= max_rows:
            th = d
    return th


# ----------------------------------------------------------------------------
# Pallas kernels
# ----------------------------------------------------------------------------

def _conv3x3_kernel(*refs, TH, W, activation, has_res, emit_csum):
    """3x3 'same' conv on one (TH, W) row tile.

    Inputs: top halo row, center TH rows, bottom halo row (all unpadded), weight
    reshaped to (9*Cin, Cout), bias (1, Cout), optional residual tile.
    Outputs: conv tile, optional per-tile channel sum (for channel attention).
    """
    top_ref, x_ref, bot_ref, w_ref, b_ref = refs[:5]
    i = 5
    r_ref = None
    if has_res:
        r_ref = refs[i]
        i += 1
    o_ref = refs[i]
    cs_ref = refs[i + 1] if emit_csum else None

    Cin = x_ref.shape[-1]
    Cout = o_ref.shape[-1]
    ht = pl.program_id(1)
    nt = pl.num_programs(1)

    # Assemble the zero-padded (TH+2, W+2, Cin) window in VMEM from halo-row blocks
    # (no HBM-level jnp.pad round trip). Halo rows are zero-masked at image borders.
    top = top_ref[0] * (ht > 0).astype(jnp.float32)
    bot = bot_ref[0] * (ht < nt - 1).astype(jnp.float32)
    xh = jnp.concatenate([top, x_ref[0], bot], axis=0)            # (TH+2, W, Cin)
    zcol = jnp.zeros((TH + 2, 1, Cin), jnp.float32)
    xp = jnp.concatenate([zcol, xh, zcol], axis=1)                # (TH+2, W+2, Cin)

    # im2col slab: one wide K = 9*Cin MXU matmul instead of 9 narrow K = Cin ones.
    cols = [xp[kh:kh + TH, kw:kw + W, :] for kh in range(3) for kw in range(3)]
    slab = jnp.concatenate(cols, axis=-1).reshape(TH * W, 9 * Cin)

    acc = jnp.dot(slab, w_ref[...], preferred_element_type=jnp.float32) + b_ref[...]
    if activation == "relu":
        acc = jnp.maximum(acc, 0.0)
    elif activation == "sigmoid":
        acc = jax.nn.sigmoid(acc)
    out = acc.reshape(TH, W, Cout)
    if has_res:
        out = out + r_ref[0]              # residual add (only used with activation='none')
    o_ref[0] = out

    if emit_csum:
        # Partial spatial sum per channel -> used by the wrapper for the CA global mean,
        # so channel attention never re-reads the full activation from HBM.
        cs = jnp.sum(out, axis=(0, 1)).reshape(1, Cout)
        cs_ref[0] = jnp.broadcast_to(cs, (8, Cout))


def _csar_tail_kernel(x_ref, xin_ref, ca_ref, wsa1_ref, bsa1_ref, wsa2_ref, bsa2_ref,
                      wc_ref, ws_ref, bo_ref, o_ref, *, TH, W):
    """Fused CSAR tail: spatial attention (1x1->ReLU->1x1->Sigmoid), channel/spatial
    gating, the 1x1 conv_out over the concatenation, and the residual add."""
    C = xin_ref.shape[-1]
    xin = xin_ref[0].reshape(TH * W, C)
    h1 = jnp.dot(xin, wsa1_ref[...], preferred_element_type=jnp.float32) + bsa1_ref[...]
    h1 = jnp.maximum(h1, 0.0)
    sa = jax.nn.sigmoid(jnp.dot(h1, wsa2_ref[...], preferred_element_type=jnp.float32)
                        + bsa2_ref[...])
    ca = ca_ref[0]                                                # (1, C) broadcast
    acc = jnp.dot(xin * ca, wc_ref[...], preferred_element_type=jnp.float32)
    acc = acc + jnp.dot(xin * sa, ws_ref[...], preferred_element_type=jnp.float32)
    acc = acc + bo_ref[...]
    o_ref[0] = x_ref[0] + acc.reshape(TH, W, C)


# ----------------------------------------------------------------------------
# Pallas wrappers
# ----------------------------------------------------------------------------

def conv3x3(x, w, b, *, activation="none", residual=None, emit_channel_sum=False):
    """NHWC 3x3 'same' conv (stride 1) with fused bias / ReLU / Sigmoid / residual.

    If emit_channel_sum, also returns the global spatial mean per channel (N, Cout),
    computed as a per-tile partial-sum epilogue inside the kernel.
    """
    N, H, W_, Cin = x.shape
    KH, KW, _, Cout = w.shape
    assert (KH, KW) == (3, 3)
    if residual is not None and activation != "none":
        # PyTorch semantics here are act(conv) then +res; only 'none' is exercised,
        # so reject anything else rather than silently picking an ordering.
        raise ValueError("residual add only supported with activation='none'")

    w2 = w.reshape(KH * KW * Cin, Cout)
    b2 = b.reshape(1, Cout)

    per_row = (2 * (Cin + Cout + (Cout if residual is not None else 0))   # I/O blocks (x2 buf)
               + 12 * Cin + 3 * Cout)                                     # in-kernel pad + im2col + acc
    TH = _pick_tile_h(H, W_, per_row)
    n_t = H // TH

    top_spec = pl.BlockSpec((1, 1, W_, Cin),
                            lambda n, h: (n, jnp.maximum(h * TH - 1, 0), 0, 0))
    mid_spec = pl.BlockSpec((1, TH, W_, Cin), lambda n, h: (n, h, 0, 0))
    bot_spec = pl.BlockSpec((1, 1, W_, Cin),
                            lambda n, h: (n, jnp.minimum(h * TH + TH, H - 1), 0, 0))
    w_spec = pl.BlockSpec((KH * KW * Cin, Cout), lambda n, h: (0, 0))
    b_spec = pl.BlockSpec((1, Cout), lambda n, h: (0, 0))

    in_specs = [top_spec, mid_spec, bot_spec, w_spec, b_spec]
    args = [x, x, x, w2, b2]
    if residual is not None:
        in_specs.append(pl.BlockSpec((1, TH, W_, Cout), lambda n, h: (n, h, 0, 0)))
        args.append(residual)

    out_spec = pl.BlockSpec((1, TH, W_, Cout), lambda n, h: (n, h, 0, 0))
    if emit_channel_sum:
        out_shape = (jax.ShapeDtypeStruct((N, H, W_, Cout), jnp.float32),
                     jax.ShapeDtypeStruct((N, n_t * 8, Cout), jnp.float32))
        out_specs = (out_spec, pl.BlockSpec((1, 8, Cout), lambda n, h: (n, h, 0)))
    else:
        out_shape = jax.ShapeDtypeStruct((N, H, W_, Cout), jnp.float32)
        out_specs = out_spec

    kernel = functools.partial(_conv3x3_kernel, TH=TH, W=W_, activation=activation,
                               has_res=residual is not None,
                               emit_csum=emit_channel_sum)
    result = pl.pallas_call(
        kernel,
        out_shape=out_shape,
        grid=(N, n_t),
        in_specs=in_specs,
        out_specs=out_specs,
        compiler_params=pltpu.CompilerParams(
            dimension_semantics=("parallel", "parallel"),
            vmem_limit_bytes=_vmem_limit_bytes()),
    )(*args)

    if emit_channel_sum:
        y, csum = result
        mean = csum.reshape(N, n_t, 8, Cout)[:, :, 0, :].sum(axis=1) / float(H * W_)
        return y, mean
    return result


def csar_tail(x, x_in, ca, p):
    """x + Conv1x1(cat([x_in*ca, x_in*SA(x_in)])), with SA fully fused in-kernel."""
    N, H, W_, C = x.shape
    wsa1 = p["sa_conv1"]["w"][0, 0]
    bsa1 = p["sa_conv1"]["b"].reshape(1, 2 * C)
    wsa2 = p["sa_conv2"]["w"][0, 0]
    bsa2 = p["sa_conv2"]["b"].reshape(1, C)
    w_full = p["conv_out"]["w"][0, 0]                 # (2C, C): rows [:C] gate=ca, [C:] gate=sa
    wc, ws = w_full[:C], w_full[C:]
    bo = p["conv_out"]["b"].reshape(1, C)

    TH = _pick_tile_h(H, W_, 16 * C)
    n_t = H // TH
    tile = pl.BlockSpec((1, TH, W_, C), lambda n, h: (n, h, 0, 0))

    def full2(shape):
        return pl.BlockSpec(shape, lambda n, h: (0, 0))

    kernel = functools.partial(_csar_tail_kernel, TH=TH, W=W_)
    return pl.pallas_call(
        kernel,
        out_shape=jax.ShapeDtypeStruct((N, H, W_, C), jnp.float32),
        grid=(N, n_t),
        in_specs=[tile, tile,
                  pl.BlockSpec((1, 1, C), lambda n, h: (n, 0, 0)),
                  full2((C, 2 * C)), full2((1, 2 * C)),
                  full2((2 * C, C)), full2((1, C)),
                  full2((C, C)), full2((C, C)), full2((1, C))],
        out_specs=tile,
        compiler_params=pltpu.CompilerParams(
            dimension_semantics=("parallel", "parallel"),
            vmem_limit_bytes=_vmem_limit_bytes()),
    )(x, x_in, ca, wsa1, bsa1, wsa2, bsa2, wc, ws, bo)


def pixel_shuffle_nhwc(x, r):
    # PyTorch PixelShuffle: out[n, c, h*r+i, w*r+j] = in[n, c*r*r + i*r + j, h, w]
    # TODO(synk): fuse this interleave into the preceding conv's output write.
    N, H, W_, Cr2 = x.shape
    C = Cr2 // (r * r)
    x = x.reshape(N, H, W_, C, r, r)
    x = jnp.transpose(x, (0, 1, 4, 2, 5, 3))
    return x.reshape(N, H * r, W_ * r, C)


# ----------------------------------------------------------------------------
# Parameter init (deterministic, mirrors module __init__ shapes)
# ----------------------------------------------------------------------------

class KeyGen:
    def __init__(self, seed):
        self.key = jax.random.PRNGKey(seed)

    def __call__(self):
        self.key, sub = jax.random.split(self.key)
        return sub


def init_conv(kg, kh, kw, cin, cout):
    scale = 1.0 / math.sqrt(cin * kh * kw)
    w = jax.random.uniform(kg(), (kh, kw, cin, cout), jnp.float32, -scale, scale)
    b = jax.random.uniform(kg(), (cout,), jnp.float32, -scale, scale)
    return {"w": w, "b": b}


def init_csar(kg, C):
    return {
        "conv1": init_conv(kg, 3, 3, C, C),
        "conv2": init_conv(kg, 3, 3, C, C),
        "ca_fc1": init_conv(kg, 1, 1, C, C // 2),
        "ca_fc2": init_conv(kg, 1, 1, C // 2, C),
        "sa_conv1": init_conv(kg, 1, 1, C, 2 * C),
        "sa_conv2": init_conv(kg, 1, 1, 2 * C, C),
        "conv_out": init_conv(kg, 1, 1, 2 * C, C),
    }


def init_fmm(kg, in_ch, out_ch, first_ch, num_layers):
    return {
        "csar": [init_csar(kg, in_ch) for _ in range(num_layers)],
        "conv": init_conv(kg, 3, 3, in_ch * 2 + first_ch, out_ch),
    }


def init_csfmnet(kg, in_ch, out_ch, fmm_ch, num_blocks, num_layers, scale_factor):
    fmm_blocks = [init_fmm(kg, fmm_ch, fmm_ch * 2, fmm_ch, num_layers)]
    for i in range(1, num_blocks):
        fmm_blocks.append(init_fmm(kg, fmm_ch + fmm_ch * i,
                                   fmm_ch + fmm_ch * (i + 1), fmm_ch, num_layers))
    num_stages = int(math.log2(scale_factor))
    return {
        "ife": init_conv(kg, 3, 3, in_ch, in_ch),
        "ftnet": {
            "conv_in": init_conv(kg, 3, 3, in_ch, fmm_ch),
            "fmm": fmm_blocks,
            "conv_out": init_conv(kg, 3, 3, fmm_ch + fmm_ch * num_blocks, out_ch),
        },
        "upscale": [init_conv(kg, 3, 3, out_ch, out_ch * 4) for _ in range(num_stages)],
        "conv_out": init_conv(kg, 3, 3, out_ch, in_ch),
    }


# ----------------------------------------------------------------------------
# Forward pass (mirrors the PyTorch module structure)
# ----------------------------------------------------------------------------

def csar_forward(p, x):
    x1 = conv3x3(x, p["conv1"]["w"], p["conv1"]["b"], activation="relu")
    # conv2 also emits the per-channel spatial sum -> channel attention never re-reads x_in.
    x_in, ch_mean = conv3x3(x1, p["conv2"]["w"], p["conv2"]["b"], emit_channel_sum=True)
    # Channel-attention MLP on the pooled (N, C) vector: M=1, kept off the MXU / out of
    # Pallas on purpose (per perf review) — the expensive global mean was fused above.
    w1 = p["ca_fc1"]["w"][0, 0]
    b1 = p["ca_fc1"]["b"]
    w2 = p["ca_fc2"]["w"][0, 0]
    b2 = p["ca_fc2"]["b"]
    hmid = jnp.maximum(ch_mean @ w1 + b1, 0.0)
    ca = jax.nn.sigmoid(hmid @ w2 + b2)                       # (N, C)
    return csar_tail(x, x_in, ca[:, None, :], p)


def fmm_forward(p, x, x_first):
    x_out = x
    for cp in p["csar"]:
        x_out = csar_forward(cp, x_out)
    cat = jnp.concatenate([x, x_out, x_first], axis=-1)
    return conv3x3(cat, p["conv"]["w"], p["conv"]["b"])


def ftnet_forward(p, x):
    x_in = conv3x3(x, p["conv_in"]["w"], p["conv_in"]["b"])
    x_out = fmm_forward(p["fmm"][0], x_in, x_in)
    for bp in p["fmm"][1:]:
        x_out = fmm_forward(bp, x_out, x_in)
    return conv3x3(x_out, p["conv_out"]["w"], p["conv_out"]["b"], residual=x)


def upscale_forward(stages, x):
    for st in stages:
        x = conv3x3(x, st["w"], st["b"], activation="relu")
        x = pixel_shuffle_nhwc(x, 2)
    return x


def csfmnet_forward(params, x_nchw):
    x = jnp.transpose(x_nchw, (0, 2, 3, 1))                   # NCHW -> NHWC
    x = conv3x3(x, params["ife"]["w"], params["ife"]["b"])
    x = ftnet_forward(params["ftnet"], x)
    x = upscale_forward(params["upscale"], x)
    # PyTorch source calls torch.functional sigmoid: element-wise sigmoid, fused into the conv.
    x = conv3x3(x, params["conv_out"]["w"], params["conv_out"]["b"], activation="sigmoid")
    return jnp.transpose(x, (0, 3, 1, 2))                     # NHWC -> NCHW


# ----------------------------------------------------------------------------

if __name__ == "__main__":
    # Small but structure-exercising configuration.
    N, IN_CH, OUT_CH = 2, 4, 4          # FTNet residual requires out_ch == in_ch
    FMM_CH = 8
    NUM_BLOCKS, NUM_LAYERS = 2, 1
    SCALE = 2
    H = W = 16

    kg = KeyGen(0)
    params = init_csfmnet(kg, IN_CH, OUT_CH, FMM_CH, NUM_BLOCKS, NUM_LAYERS, SCALE)

    x = jax.random.normal(jax.random.PRNGKey(0), (N, IN_CH, H, W), jnp.float32)

    out = csfmnet_forward(params, x)
    out = jax.block_until_ready(out)

    expected = (N, IN_CH, H * SCALE, W * SCALE)
    assert out.shape == expected, (out.shape, expected)
    assert bool(jnp.all(jnp.isfinite(out)))
    assert bool(jnp.all((out >= 0.0) & (out <= 1.0)))          # final sigmoid
    print("KERNEL_OK")
</pallas_src>

<mosaic_0001>
module attributes {stable_mosaic.version = 11 : i64} {
  func.func @_conv3x3_kernel(%arg0: i32, %arg1: i32, %arg2: memref<1x1x16x4xf32, #tpu.memory_space<vmem>>, %arg3: memref<1x16x16x4xf32, #tpu.memory_space<vmem>>, %arg4: memref<1x1x16x4xf32, #tpu.memory_space<vmem>>, %arg5: memref<36x4xf32, #tpu.memory_space<vmem>>, %arg6: memref<1x4xf32, #tpu.memory_space<vmem>>, %arg7: memref<1x16x16x4xf32, #tpu.memory_space<vmem>>) attributes {dimension_semantics = [#tpu.dimension_semantics<parallel>, #tpu.dimension_semantics<parallel>], iteration_bounds = array<i64: 2, 1>, scalar_prefetch = 0 : i64, scratch_operands = 0 : i64, tpu.core_type = #tpu.core_type<tc>, window_params = [{transform_indices = @transform_0, window_bounds = array<i64: 1, 1, 16, 4>}, {transform_indices = @transform_1, window_bounds = array<i64: 1, 16, 16, 4>}, {transform_indices = @transform_2, window_bounds = array<i64: 1, 1, 16, 4>}, {pipeline_mode = #tpu.pipeline_mode<synchronous>, transform_indices = @transform_3, window_bounds = array<i64: 36, 4>}, {pipeline_mode = #tpu.pipeline_mode<synchronous>, transform_indices = @transform_4, window_bounds = array<i64: 1, 4>}, {transform_indices = @transform_5, window_bounds = array<i64: 1, 16, 16, 4>}]} {
    %c0 = arith.constant 0 : index
    %c0_0 = arith.constant 0 : index
    %c0_1 = arith.constant 0 : index
    %c0_2 = arith.constant 0 : index
    %0 = vector.load %arg2[%c0, %c0_0, %c0_1, %c0_2] : memref<1x1x16x4xf32, #tpu.memory_space<vmem>>, vector<1x1x16x4xf32>
    %1 = vector.shape_cast %0 : vector<1x1x16x4xf32> to vector<1x16x4xf32>
    %c0_i32 = arith.constant 0 : i32
    %2 = arith.cmpi sgt, %arg1, %c0_i32 : i32
    %3 = arith.extui %2 : i1 to i32
    %4 = arith.sitofp %3 : i32 to f32
    %5 = vector.broadcast %4 : f32 to vector<1x16x4xf32>
    %6 = arith.mulf %1, %5 : vector<1x16x4xf32>
    %c0_3 = arith.constant 0 : index
    %c0_4 = arith.constant 0 : index
    %c0_5 = arith.constant 0 : index
    %c0_6 = arith.constant 0 : index
    %7 = vector.load %arg4[%c0_3, %c0_4, %c0_5, %c0_6] : memref<1x1x16x4xf32, #tpu.memory_space<vmem>>, vector<1x1x16x4xf32>
    %8 = vector.shape_cast %7 : vector<1x1x16x4xf32> to vector<1x16x4xf32>
    %c0_i32_7 = arith.constant 0 : i32
    %9 = arith.cmpi slt, %arg1, %c0_i32_7 : i32
    %10 = arith.extui %9 : i1 to i32
    %11 = arith.sitofp %10 : i32 to f32
    %12 = vector.broadcast %11 : f32 to vector<1x16x4xf32>
    %13 = arith.mulf %8, %12 : vector<1x16x4xf32>
    %c0_8 = arith.constant 0 : index
    %c0_9 = arith.constant 0 : index
    %c0_10 = arith.constant 0 : index
    %c0_11 = arith.constant 0 : index
    %14 = vector.load %arg3[%c0_8, %c0_9, %c0_10, %c0_11] : memref<1x16x16x4xf32, #tpu.memory_space<vmem>>, vector<1x16x16x4xf32>
    %15 = vector.shape_cast %14 : vector<1x16x16x4xf32> to vector<16x16x4xf32>
    %16 = tpu.concatenate %6, %15, %13 in 0 : vector<1x16x4xf32>, vector<16x16x4xf32>, vector<1x16x4xf32> -> vector<18x16x4xf32>
    %cst = arith.constant 0.000000e+00 : f32
    %17 = vector.broadcast %cst : f32 to vector<18x1x4xf32>
    %18 = tpu.concatenate %17, %16, %17 in 1 : vector<18x1x4xf32>, vector<18x16x4xf32>, vector<18x1x4xf32> -> vector<18x18x4xf32>
    %19 = vector.extract_strided_slice %18 {offsets = [0, 0, 0], sizes = [16, 16, 4], strides = [1, 1, 1]} : vector<18x18x4xf32> to vector<16x16x4xf32>
    %20 = vector.extract_strided_slice %18 {offsets = [0, 1, 0], sizes = [16, 16, 4], strides = [1, 1, 1]} : vector<18x18x4xf32> to vector<16x16x4xf32>
    %21 = vector.extract_strided_slice %18 {offsets = [0, 2, 0], sizes = [16, 16, 4], strides = [1, 1, 1]} : vector<18x18x4xf32> to vector<16x16x4xf32>
    %22 = vector.extract_strided_slice %18 {offsets = [1, 0, 0], sizes = [16, 16, 4], strides = [1, 1, 1]} : vector<18x18x4xf32> to vector<16x16x4xf32>
    %23 = vector.extract_strided_slice %18 {offsets = [1, 1, 0], sizes = [16, 16, 4], strides = [1, 1, 1]} : vector<18x18x4xf32> to vector<16x16x4xf32>
    %24 = vector.extract_strided_slice %18 {offsets = [1, 2, 0], sizes = [16, 16, 4], strides = [1, 1, 1]} : vector<18x18x4xf32> to vector<16x16x4xf32>
    %25 = vector.extract_strided_slice %18 {offsets = [2, 0, 0], sizes = [16, 16, 4], strides = [1, 1, 1]} : vector<18x18x4xf32> to vector<16x16x4xf32>
    %26 = vector.extract_strided_slice %18 {offsets = [2, 1, 0], sizes = [16, 16, 4], strides = [1, 1, 1]} : vector<18x18x4xf32> to vector<16x16x4xf32>
    %27 = vector.extract_strided_slice %18 {offsets = [2, 2, 0], sizes = [16, 16, 4], strides = [1, 1, 1]} : vector<18x18x4xf32> to vector<16x16x4xf32>
    %28 = tpu.concatenate %19, %20, %21, %22, %23, %24, %25, %26, %27 in 2 : vector<16x16x4xf32>, vector<16x16x4xf32>, vector<16x16x4xf32>, vector<16x16x4xf32>, vector<16x16x4xf32>, vector<16x16x4xf32>, vector<16x16x4xf32>, vector<16x16x4xf32>, vector<16x16x4xf32> -> vector<16x16x36xf32>
    %29 = vector.shape_cast %28 : vector<16x16x36xf32> to vector<256x36xf32>
    %c0_12 = arith.constant 0 : index
    %c0_13 = arith.constant 0 : index
    %30 = vector.load %arg5[%c0_12, %c0_13] : memref<36x4xf32, #tpu.memory_space<vmem>>, vector<36x4xf32>
    %cst_14 = arith.constant dense<0.000000e+00> : vector<256x4xf32>
    %31 = tpu.matmul %29, %30, %cst_14 {dimension_numbers = #tpu.dot_dimension_numbers<[1], [0], [0], [1], [0, 0, 1, 1], [], []>} : vector<256x36xf32>, vector<36x4xf32>, vector<256x4xf32> -> vector<256x4xf32>
    %c0_15 = arith.constant 0 : index
    %c0_16 = arith.constant 0 : index
    %32 = vector.load %arg6[%c0_15, %c0_16] : memref<1x4xf32, #tpu.memory_space<vmem>>, vector<1x4xf32>
    %33 = vector.broadcast %32 : vector<1x4xf32> to vector<256x4xf32>
    %34 = arith.addf %31, %33 : vector<256x4xf32>
    %35 = vector.shape_cast %34 : vector<256x4xf32> to vector<16x16x4xf32>
    %c0_17 = arith.constant 0 : index
    %c0_18 = arith.constant 0 : index
    %c0_19 = arith.constant 0 : index
    %c0_20 = arith.constant 0 : index
    %36 = vector.load %arg7[%c0_17, %c0_18, %c0_19, %c0_20] : memref<1x16x16x4xf32, #tpu.memory_space<vmem>>, vector<1x16x16x4xf32>
    %37 = vector.shape_cast %36 : vector<1x16x16x4xf32> to vector<16x16x4xf32>
    %38 = vector.shape_cast %35 : vector<16x16x4xf32> to vector<1x16x16x4xf32>
    tpu.vector_store %arg7[%c0_17, %c0_18, %c0_19, %c0_20], %38 {strides = array<i32>} : memref<1x16x16x4xf32, #tpu.memory_space<vmem>>, vector<1x16x16x4xf32>,
    return
  }
  func.func @transform_0(%arg0: i32, %arg1: i32) -> (i32, i32, i32, i32) {
    %c16_i32 = arith.constant 16 : i32
    %0 = arith.muli %arg1, %c16_i32 : i32
    %c1_i32 = arith.constant 1 : i32
    %1 = arith.subi %0, %c1_i32 : i32
    %c0_i32 = arith.constant 0 : i32
    %2 = arith.maxsi %1, %c0_i32 : i32
    %c0_i32_0 = arith.constant 0 : i32
    %c0_i32_1 = arith.constant 0 : i32
    %c0_i32_2 = arith.constant 0 : i32
    return %arg0, %2, %c0_i32_0, %c0_i32_1 : i32, i32, i32, i32
  }
  func.func @transform_1(%arg0: i32, %arg1: i32) -> (i32, i32, i32, i32) {
    %c0_i32 = arith.constant 0 : i32
    %c0_i32_0 = arith.constant 0 : i32
    %c0_i32_1 = arith.constant 0 : i32
    return %arg0, %arg1, %c0_i32, %c0_i32_0 : i32, i32, i32, i32
  }
  func.func @transform_2(%arg0: i32, %arg1: i32) -> (i32, i32, i32, i32) {
    %c16_i32 = arith.constant 16 : i32
    %0 = arith.muli %arg1, %c16_i32 : i32
    %c16_i32_0 = arith.constant 16 : i32
    %1 = arith.addi %0, %c16_i32_0 : i32
    %c15_i32 = arith.constant 15 : i32
    %2 = arith.minsi %1, %c15_i32 : i32
    %c0_i32 = arith.constant 0 : i32
    %c0_i32_1 = arith.constant 0 : i32
    %c0_i32_2 = arith.constant 0 : i32
    return %arg0, %2, %c0_i32, %c0_i32_1 : i32, i32, i32, i32
  }
  func.func @transform_3(%arg0: i32, %arg1: i32) -> (i32, i32) {
    %c0_i32 = arith.constant 0 : i32
    %c0_i32_0 = arith.constant 0 : i32
    %c0_i32_1 = arith.constant 0 : i32
    return %c0_i32, %c0_i32_0 : i32, i32
  }
  func.func @transform_4(%arg0: i32, %arg1: i32) -> (i32, i32) {
    %c0_i32 = arith.constant 0 : i32
    %c0_i32_0 = arith.constant 0 : i32
    %c0_i32_1 = arith.constant 0 : i32
    return %c0_i32, %c0_i32_0 : i32, i32
  }
  func.func @transform_5(%arg0: i32, %arg1: i32) -> (i32, i32, i32, i32) {
    %c0_i32 = arith.constant 0 : i32
    %c0_i32_0 = arith.constant 0 : i32
    %c0_i32_1 = arith.constant 0 : i32
    return %arg0, %arg1, %c0_i32, %c0_i32_0 : i32, i32, i32, i32
  }
}

</mosaic_0001>

<bundles_post_ra>
// kernel: tpu_custom_call.1
= control target key start
LH: loop header
LB: loop body
LE: loop exit
PB: predicated region body
PF: predicated region fallthrough
CT: control target
= control target key end

     0   :  { %s2427_s18 = smov 0   ;;  %s2429_s19 = smov 0   ;;  %s4444_s0 = inlined_call_operand.vmem [shape: f32[2,16,16,4], index: 0, kind: input, shape index: {}]   ;;  %s4445_s1 = inlined_call_operand.vmem [shape: f32[2,16,16,4], index: 1, kind: input, shape index: {}]   ;;  %s4446_s2 = inlined_call_operand.vmem [shape: f32[2,16,16,4], index: 2, kind: input, shape index: {}]   ;;  %s4447_s3 = inlined_call_operand.vmem [shape: f32[36,4], index: 3, kind: input, shape index: {}]   ;;  %s4448_s4 = inlined_call_operand.vmem [shape: f32[1,4], index: 4, kind: input, shape index: {}]   ;;  %s4449_s5 = inlined_call_operand.vmem [shape: f32[2,16,16,4], index: 5, kind: output, shape index: {}]  }
   0x1   :  { %s2431_s20 = smov 0  }
   0x2 LB: > { %s27_s21 = sadd.s32 1, %s2383_s19  ;;  %p2267_p0 = scmp.ge.s32.totalorder %s2387_s20, 1  ;;  %s2387_s20 = sphi %s2431_s20, %s15_s20   ;;  %s2383_s19 = sphi %s2429_s19, %s4948_s19   ;;  %s2379_s18 = sphi %s2427_s18, %s4947_s18  }
   0x3   : > { %p29_p1 = scmp.ge.s32.totalorder %s27_s21, 2  ;;  %p273_p2 = scmp.lt.s32.totalorder %s2387_s20, 3 }
   0x5   : > { %s4950_s21 = smov (%p29_p1, %s27_s21), 0  ;;  %p274_p3 = pnand %p2267_p0, %p273_p2 }
   0x7   : > { %277 = sbr.rel (%p274_p3) target bundleno = 953 (0x3b9), region = 40 }
   0xc   : > { %p341_p4 = scmp.lt.s32.totalorder %s2379_s18, 1  ;;  %vm477_vm0 = vcmask 1040384   ;;  %vm652_vm1 = vcmask 1046528   ;;  %s2389_s29 = smov 4   ;;  %vm829_vm2 = vcmask 1045504   ;;  %vm1606_vm3 = vcmask 31744  }
   0xd   : > { %s2390_s30 = smov 8   ;;  %s2391_s6 = smov 12   ;;  %vm1639_vm4 = vcmask 64512   ;;  %vm1672_vm5 = vcmask 97280   ;;  %vm1705_vm6 = vcmask 130048   ;;  %vm1738_vm7 = vcmask 162816  }
   0xe   : > { %s4952_s18 = smov (!%p341_p4, %s2379_s18), 1  ;;  %s2392_s7 = smov 16   ;;  %vm1771_vm8 = vcmask 195584   ;;  %vm1976_vm9 = vcmask 1043456   ;;  %vm1804_vm10 = vcmask 228352   ;;  %vm1837_vm11 = vcmask 261120  }
   0xf   : > { %s2445_s22 = sshll.u32 %s4952_s18, 8  ;;  %s2393_s8 = smov 20   ;;  %vm1879_vm12 = vcmask 293888  }
  0x10   : > { %s2451_s25 = scalar_lea.vmem %s4445_s1, %s2445_s22  ;;  %s349_s28 = scalar_lea.vmem %s4444_s0, %s2445_s22 }
  0x11   : > { %v411_v0 = vld [vmem:[%s2451_s25 + $0x10] sm:$0xff]  ;;  %v412_v1 = vld [vmem:[%s2451_s25 + $0x18] sm:$0xff]  ;;  %v409_v2 = vld [vmem:[%s2451_s25] sm:$0xff]  ;;  %s2394_s9 = smov 24   ;;  %s2395_s10 = smov 32  }
  0x12   : > { %v484_v3 = vrot.slane %v411_v0, 7  ;;  %v485_v4 = vrot.slane %v412_v1, 7  ;;  %v410_v5 = vld [vmem:[%s2451_s25 + $0x8] sm:$0xff]  ;;  %v481_v6 = vrot.slane %v409_v2, 7  ;;  %v393_v7 = vld [vmem:[%s349_s28] sm:$0xff]  ;;  %v415_v25 = vld [vmem:[%s2451_s25 + $0x30] sm:$0xff] }
  0x13   : > { %v394_v8 = vld [vmem:[%s349_s28 + $0x8] sm:$0xff]  ;;  %v482_v9 = vrot.slane %v410_v5, 7  ;;  %v399_v10 = vmul.f32 0.0, %v393_v7  ;;  %v416_v26 = vld [vmem:[%s2451_s25 + $0x38] sm:$0xff]  ;;  %v413_v30 = vld [vmem:[%s2451_s25 + $0x20] sm:$0xff]  ;;  %v490_v37 = vrot.slane %v415_v25, 7 }
  0x14   : > { %v400_v11 = vmul.f32 0.0, %v394_v8  ;;  %v2462_v12 = vsel %vm477_vm0, %v484_v3, %v485_v4  ;;  %v2465_v13 = vsel %vm477_vm0, 0.0, %v484_v3  ;;  %v2468_v14 = vsel %vm477_vm0, 0.0, %v481_v6  ;;  %v414_v34 = vld [vmem:[%s2451_s25 + $0x28] sm:$0xff]  ;;  %v417_v49 = vld [vmem:[%s2451_s25 + $0x40] sm:$0xff]  ;;  %v419_v3 = vld [vmem:[%s2451_s25 + $0x50] sm:$0xff] }
  0x15   : > { %4567 = vst [vmem:[#allocation2_spill] sm:$0xff] %v2462_v12  ;;  %v663_v15 = vrot.slane %v2465_v13, 1  ;;  %v664_v16 = vrot.slane %v2462_v12, 1  ;;  %v2473_v17 = vsel %vm477_vm0, %v481_v6, %v482_v9  ;;  %v658_v18 = vrot.slane %v2468_v14, 1  ;;  %v418_v50 = vld [vmem:[%s2451_s25 + $0x48] sm:$0xff]  ;;  %v421_v1 = vld [vmem:[%s2451_s25 + $0x60] sm:$0xff] }
  0x16   : > { %4568 = vst [vmem:[#allocation3_spill] sm:$0xff] %v2468_v14  ;;  %v659_v19 = vrot.slane %v2473_v17, 1  ;;  %v478_v20 = vrot.slane %v399_v10, 7  ;;  %v479_v21 = vrot.slane %v400_v11, 7  ;;  %v2478_v22 = vsel %vm477_vm0, %v485_v4, 0.0  ;;  %v422_v2 = vld [vmem:[%s2451_s25 + $0x68] sm:$0xff] }
  0x17   : > { %4569 = vst [vmem:[#allocation4_spill] sm:$0xff] %v2473_v17  ;;  %v2481_v23 = vsel %vm652_vm1, %v663_v15, %v664_v16  ;;  %v2484_v24 = vsel %vm477_vm0, %v482_v9, 0.0  ;;  %v666_v33 = vrot.slane %v2478_v22, 1  ;;  %v491_v38 = vrot.slane %v416_v26, 7  ;;  %v420_v4 = vld [vmem:[%s2451_s25 + $0x58] sm:$0xff]  ;;  %v423_v26 = vld [vmem:[%s2451_s25 + $0x70] sm:$0xff] }
  0x18   : > { %741 = vrot.lane.b32.xlu2 %v2481_v23, %s2389_s29  ;;  %v2491_v27 = vsel %vm652_vm1, %v658_v18, %v659_v19  ;;  %v2494_v28 = vsel %vm477_vm0, %v478_v20, %v479_v21  ;;  %v2497_v29 = vsel %vm477_vm0, 0.0, %v478_v20  ;;  %v661_v35 = vrot.slane %v2484_v24, 1  ;;  %s2396_s11 = smov 28   ;;  %s2314_s26 = sadd.s32 240, %s2445_s22 }
  0x19   : > { %4570 = vst [vmem:[#allocation5_spill] sm:$0xff] %v2494_v28  ;;  %737 = vrot.lane.b32.xlu1 %v2491_v27, %s2389_s29  ;;  %v653_v31 = vrot.slane %v2497_v29, 1  ;;  %v654_v32 = vrot.slane %v2494_v28, 1  ;;  %v2508_v36 = vsel %vm477_vm0, %v479_v21, 0.0  ;;  %v487_v40 = vrot.slane %v413_v30, 7 }
  0x1a   : > { %4571 = vst [vmem:[#allocation6_spill] sm:$0xff] %v2497_v29  ;;  %v488_v41 = vrot.slane %v414_v34, 7  ;;  %v2513_v42 = vsel %vm652_vm1, %v664_v16, %v666_v33  ;;  %v656_v43 = vrot.slane %v2508_v36, 1  ;;  %v2517_v44 = vsel %vm652_vm1, %v659_v19, %v661_v35 }
  0x1b   : > { %v655_v39 = vsel %vm652_vm1, %v653_v31, %v654_v32  ;;  %4572 = vst [vmem:[#allocation7_spill] sm:$0xff] %v2513_v42  ;;  %v2520_v45 = vsel %vm477_vm0, %v490_v37, %v491_v38  ;;  %v2523_v46 = vsel %vm477_vm0, 0.0, %v490_v37  ;;  %v2541_v54 = vsel %vm477_vm0, 0.0, %v487_v40 }
  0x1c   : > { %733 = vrot.lane.b32.xlu0 %v655_v39, %s2389_s29  ;;  %4573 = vst [vmem:[#allocation8_spill] sm:$0xff] %v2520_v45  ;;  %v2526_v47 = vsel %vm477_vm0, %v487_v40, %v488_v41  ;;  %v2529_v48 = vsel %vm477_vm0, %v488_v41, 0.0  ;;  %v657_v51 = vsel %vm652_vm1, %v654_v32, %v656_v43  ;;  %v673_v52 = vrot.slane %v2523_v46, 1  ;;  %v424_v32 = vld [vmem:[%s2451_s25 + $0x78] sm:$0xff] }
  0x1d   : > { %4574 = vst [vmem:[#allocation9_spill] sm:$0xff] %v2523_v46  ;;  %v674_v53 = vrot.slane %v2520_v45, 1  ;;  %v669_v55 = vrot.slane %v2526_v47, 1  ;;  %v671_v56 = vrot.slane %v2529_v48, 1  ;;  %v493_v57 = vrot.slane %v417_v49, 7 }
  0x1e   : > { %4575 = vst [vmem:[#allocation10_spill] sm:$0xff] %v2541_v54  ;;  %v494_v58 = vrot.slane %v418_v50, 7  ;;  %v668_v60 = vrot.slane %v2541_v54, 1  ;;  %v2577_v9 = vsel %vm477_vm0, %v491_v38, 0.0  ;;  %v499_v10 = vrot.slane %v421_v1, 7 }
  0x1f   : > { %v2547_v59 = vsel %vm652_vm1, %v673_v52, %v674_v53  ;;  %v2551_v61 = vsel %vm652_vm1, %v669_v55, %v671_v56  ;;  %v2560_v0 = vsel %vm477_vm0, 0.0, %v493_v57  ;;  %v500_v11 = vrot.slane %v422_v2, 7  ;;  %v428_v56 = vld [vmem:[%s2451_s25 + $0x98] sm:$0xff] }
  0x20   : > { %743 = vrot.lane.b32.xlu2 %v2513_v42, %s2389_s29  ;;  %4576 = vst [vmem:[#allocation11_spill] sm:$0xff] %v2547_v59  ;;  %v2554_v62 = vsel %vm477_vm0, %v493_v57, %v494_v58  ;;  %v2557_v63 = vsel %vm477_vm0, %v494_v58, 0.0  ;;  %v2571_v5 = vsel %vm652_vm1, %v668_v60, %v669_v55  ;;  %v678_v8 = vrot.slane %v2560_v0, 1  ;;  %v427_v55 = vld [vmem:[%s2451_s25 + $0x90] sm:$0xff]  ;;  %v425_v57 = vld [vmem:[%s2451_s25 + $0x80] sm:$0xff]  ;;  %v426_v58 = vld [vmem:[%s2451_s25 + $0x88] sm:$0xff] }
  0x21   : > { %739 = vrot.lane.b32.xlu1 %v2517_v44, %s2389_s29  ;;  %4577 = vst [vmem:[#allocation12_spill] sm:$0xff] %v2551_v61  ;;  %v679_v6 = vrot.slane %v2554_v62, 1  ;;  %v681_v7 = vrot.slane %v2557_v63, 1  ;;  %v496_v15 = vrot.slane %v419_v3, 7  ;;  %v497_v16 = vrot.slane %v420_v4, 7 }
  0x22   : > { %4578 = vst [vmem:[#allocation13_spill] sm:$0xff] %v2554_v62  ;;  %v676_v19 = vrot.slane %v2577_v9, 1  ;;  %v2589_v21 = vsel %vm477_vm0, %v499_v10, %v500_v11  ;;  %v2592_v25 = vsel %vm477_vm0, 0.0, %v499_v10  ;;  %v502_v37 = vrot.slane %v423_v26, 7 }
  0x23   : > { %4579 = vst [vmem:[#allocation14_spill] sm:$0xff] %v2571_v5  ;;  %v2582_v18 = vsel %vm652_vm1, %v679_v6, %v681_v7  ;;  %v2586_v20 = vsel %vm652_vm1, %v678_v8, %v679_v6  ;;  %v2596_v30 = vsel %vm477_vm0, %v496_v15, %v497_v16  ;;  %v2599_v31 = vsel %vm477_vm0, %v497_v16, 0.0 }
  0x24   : > { %735 = vrot.lane.b32.xlu0 %v657_v51, %s2389_s29  ;;  %4580 = vst [vmem:[#allocation15_spill] sm:$0xff] %v2582_v18  ;;  %v2607_v33 = vsel %vm652_vm1, %v674_v53, %v676_v19  ;;  %v688_v34 = vrot.slane %v2592_v25, 1  ;;  %v689_v35 = vrot.slane %v2589_v21, 1  ;;  %v684_v38 = vrot.slane %v2596_v30, 1 }
  0x25   : > { %4581 = vst [vmem:[#allocation16_spill] sm:$0xff] %v2586_v20  ;;  %v686_v39 = vrot.slane %v2599_v31, 1  ;;  %v2614_v40 = vsel %vm477_vm0, 0.0, %v496_v15  ;;  %v503_v41 = vrot.slane %v424_v32, 7  ;;  %v2632_v53 = vsel %vm477_vm0, 0.0, %v502_v37 }
  0x26   : > { %4582 = vst [vmem:[#allocation17_spill] sm:$0xff] %v2607_v33  ;;  %v2619_v43 = vsel %vm652_vm1, %v688_v34, %v689_v35  ;;  %v683_v49 = vrot.slane %v2614_v40, 1  ;;  %v693_v3 = vrot.slane %v2632_v53, 1  ;;  %v2649_v4 = vsel %vm477_vm0, %v500_v11, 0.0 }
  0x27   : > { %4583 = vst [vmem:[#allocation18_spill] sm:$0xff] %v2614_v40  ;;  %v2623_v50 = vsel %vm652_vm1, %v684_v38, %v686_v39  ;;  %v2626_v51 = vsel %vm477_vm0, %v502_v37, %v503_v41  ;;  %v2629_v52 = vsel %vm477_vm0, %v503_v41, 0.0  ;;  %v508_v6 = vrot.slane %v427_v55, 7  ;;  %v429_v37 = vld [vmem:[%s2451_s25 + $0xa0] sm:$0xff] }
  0x28   : > { %749 = vrot.lane.b32.xlu2 %v2547_v59, %s2389_s29  ;;  %4584 = vst [vmem:[#allocation19_spill] sm:$0xff] %v2619_v43  ;;  %v2643_v60 = vsel %vm652_vm1, %v683_v49, %v684_v38  ;;  %v694_v1 = vrot.slane %v2626_v51, 1  ;;  %v696_v2 = vrot.slane %v2629_v52, 1  ;;  %v509_v7 = vrot.slane %v428_v56, 7  ;;  %v430_v38 = vld [vmem:[%s2451_s25 + $0xa8] sm:$0xff] }
  0x29   : > { %747 = vrot.lane.b32.xlu1 %v2551_v61, %s2389_s29  ;;  %4585 = vst [vmem:[#allocation20_spill] sm:$0xff] %v2623_v50  ;;  %v505_v8 = vrot.slane %v425_v57, 7  ;;  %v506_v10 = vrot.slane %v426_v58, 7  ;;  %v691_v16 = vrot.slane %v2649_v4, 1  ;;  %v2664_v11 = vsel %vm477_vm0, 0.0, %v508_v6 }
  0x2a   : > { %4586 = vst [vmem:[#allocation21_spill] sm:$0xff] %v2643_v60  ;;  %v2654_v15 = vsel %vm652_vm1, %v694_v1, %v696_v2  ;;  %v2658_v19 = vsel %vm652_vm1, %v693_v3, %v694_v1  ;;  %v2661_v26 = vsel %vm477_vm0, %v508_v6, %v509_v7  ;;  %v703_v41 = vrot.slane %v2664_v11, 1 }
  0x2b   : > { %4587 = vst [vmem:[#allocation22_spill] sm:$0xff] %v2654_v15  ;;  %v2667_v32 = vsel %vm477_vm0, %v505_v8, %v506_v10  ;;  %v2670_v34 = vsel %vm477_vm0, %v506_v10, 0.0  ;;  %v2679_v39 = vsel %vm652_vm1, %v689_v35, %v691_v16  ;;  %v704_v49 = vrot.slane %v2661_v26, 1  ;;  %v433_v16 = vld [vmem:[%s2451_s25 + $0xc0] sm:$0xff] }
  0x2c   : > { %745 = vrot.lane.b32.xlu0 %v2571_v5, %s2389_s29  ;;  %4588 = vst [vmem:[#allocation23_spill] sm:$0xff] %v2658_v19  ;;  %v2684_v55 = vsel %vm477_vm0, 0.0, %v505_v8  ;;  %v699_v56 = vrot.slane %v2667_v32, 1  ;;  %v701_v57 = vrot.slane %v2670_v34, 1  ;;  %v511_v58 = vrot.slane %v429_v37, 7  ;;  %v434_v37 = vld [vmem:[%s2451_s25 + $0xc8] sm:$0xff] }
  0x2d   : > { %4589 = vst [vmem:[#allocation24_spill] sm:$0xff] %v2679_v39  ;;  %v512_v1 = vrot.slane %v430_v38, 7  ;;  %v698_v35 = vrot.slane %v2684_v55, 1  ;;  %v2692_v2 = vsel %vm652_vm1, %v703_v41, %v704_v49  ;;  %v431_v38 = vld [vmem:[%s2451_s25 + $0xb0] sm:$0xff] }
  0x2e   : > { %4590 = vst [vmem:[#allocation25_spill] sm:$0xff] %v2692_v2  ;;  %v2695_v3 = vsel %vm652_vm1, %v699_v56, %v701_v57  ;;  %v2704_v10 = vsel %vm477_vm0, 0.0, %v511_v58 }
  0x2f   : > { %4591 = vst [vmem:[#allocation26_spill] sm:$0xff] %v2695_v3  ;;  %v2698_v6 = vsel %vm477_vm0, %v511_v58, %v512_v1  ;;  %v2701_v8 = vsel %vm477_vm0, %v512_v1, 0.0  ;;  %v2713_v41 = vsel %vm652_vm1, %v698_v35, %v699_v56  ;;  %v708_v58 = vrot.slane %v2704_v10, 1 }
  0x30   : > { %755 = vrot.lane.b32.xlu2 %v2582_v18, %s2389_s29  ;;  %4592 = vst [vmem:[#allocation27_spill] sm:$0xff] %v2698_v6  ;;  %v709_v57 = vrot.slane %v2698_v6, 1  ;;  %v711_v1 = vrot.slane %v2701_v8, 1 }
  0x31   : > { %753 = vrot.lane.b32.xlu1 %v2586_v20, %s2389_s29  ;;  %4593 = vst [vmem:[#allocation28_spill] sm:$0xff] %v2713_v41 }
  0x32   : > { %v2726_v56 = vsel %vm652_vm1, %v709_v57, %v711_v1 }
  0x33   : > { %4594 = vst [vmem:[#allocation29_spill] sm:$0xff] %v2726_v56 }
  0x34   : > { %751 = vrot.lane.b32.xlu0 %v2607_v33, %s2389_s29 }
  0x38   : > { %761 = vrot.lane.b32.xlu2 %v2619_v43, %s2389_s29  ;;  %v2721_v43 = vsel %vm477_vm0, %v509_v7, 0.0 }
  0x39   : > { %759 = vrot.lane.b32.xlu1 %v2623_v50, %s2389_s29  ;;  %v706_v35 = vrot.slane %v2721_v43, 1 }
  0x3c   : > { %757 = vrot.lane.b32.xlu0 %v2643_v60, %s2389_s29 }
  0x40   : > { %767 = vrot.lane.b32.xlu2 %v2654_v15, %s2389_s29  ;;  %v432_v15 = vld [vmem:[%s2451_s25 + $0xb8] sm:$0xff] }
  0x41   : > { %765 = vrot.lane.b32.xlu1 %v2658_v19, %s2389_s29  ;;  %v518_v19 = vrot.slane %v434_v37, 7  ;;  %v515_v18 = vrot.slane %v432_v15, 7  ;;  %v435_v37 = vld [vmem:[%s2451_s25 + $0xd0] sm:$0xff] }
  0x43   : > { %v2742_v15 = vsel %vm477_vm0, %v515_v18, 0.0 }
  0x44   : > { %763 = vrot.lane.b32.xlu0 %v2679_v39, %s2389_s29  ;;  %v517_v39 = vrot.slane %v433_v16, 7 }
  0x46   : > { %v2733_v60 = vsel %vm477_vm0, %v517_v39, %v518_v19  ;;  %v2736_v7 = vsel %vm477_vm0, 0.0, %v517_v39 }
  0x47   : > { %4596 = vst [vmem:[#allocation31_spill] sm:$0xff] %v2733_v60  ;;  %v718_v39 = vrot.slane %v2736_v7, 1  ;;  %v719_v1 = vrot.slane %v2733_v60, 1 }
  0x48   : > { %773 = vrot.lane.b32.xlu2 %v2692_v2, %s2389_s29  ;;  %v514_v2 = vrot.slane %v431_v38, 7  ;;  %4597 = vst [vmem:[#allocation32_spill] sm:$0xff] %v2736_v7  ;;  %v436_v38 = vld [vmem:[%s2451_s25 + $0xd8] sm:$0xff] }
  0x49   : > { %771 = vrot.lane.b32.xlu1 %v2695_v3, %s2389_s29  ;;  %v2730_v3 = vsel %vm652_vm1, %v708_v58, %v709_v57  ;;  %v2751_v57 = vsel %vm652_vm1, %v704_v49, %v706_v35  ;;  %v716_v58 = vrot.slane %v2742_v15, 1  ;;  %v521_v50 = vrot.slane %v436_v38, 7  ;;  %v438_v38 = vld [vmem:[%s2451_s25 + $0xe8] sm:$0xff] }
  0x4a   : > { %4595 = vst [vmem:[#allocation30_spill] sm:$0xff] %v2730_v3  ;;  %v2739_v16 = vsel %vm477_vm0, %v514_v2, %v515_v18  ;;  %v2763_v49 = vsel %vm652_vm1, %v718_v39, %v719_v1  ;;  %v524_v42 = vrot.slane %v438_v38, 7 }
  0x4b   : > { %4598 = vst [vmem:[#allocation33_spill] sm:$0xff] %v2739_v16  ;;  %v714_v18 = vrot.slane %v2739_v16, 1  ;;  %v2773_v33 = vsel %vm477_vm0, %v521_v50, 0.0 }
  0x4c   : > { %769 = vrot.lane.b32.xlu0 %v2713_v41, %s2389_s29  ;;  %4599 = vst [vmem:[#allocation34_spill] sm:$0xff] %v2751_v57  ;;  %v2758_v41 = vsel %vm477_vm0, 0.0, %v514_v2  ;;  %v2806_v5 = vsel %vm477_vm0, %v524_v42, 0.0 }
  0x4d   : > { %4600 = vst [vmem:[#allocation35_spill] sm:$0xff] %v2758_v41  ;;  %v713_v35 = vrot.slane %v2758_v41, 1 }
  0x4e   : > { %4601 = vst [vmem:[#allocation36_spill] sm:$0xff] %v2763_v49 }
  0x4f   : > { %v2785_v39 = vsel %vm652_vm1, %v713_v35, %v714_v18 }
  0x50   : > { %779 = vrot.lane.b32.xlu2 %v2726_v56, %s2389_s29  ;;  %v520_v56 = vrot.slane %v435_v37, 7  ;;  %v437_v37 = vld [vmem:[%s2451_s25 + $0xe0] sm:$0xff]  ;;  %4604 = vst [vmem:[#allocation39_spill] sm:$0xff] %v2785_v39 }
  0x51   : > { %777 = vrot.lane.b32.xlu1 %v2730_v3, %s2389_s29  ;;  %v2767_v3 = vsel %vm652_vm1, %v714_v18, %v716_v58  ;;  %v523_v20 = vrot.slane %v437_v37, 7  ;;  %v831_v37 = vrot.slane %v2494_v28, 2  ;;  %v838_v28 = vrot.slane %v2484_v24, 2 }
  0x52   : > { %4602 = vst [vmem:[#allocation37_spill] sm:$0xff] %v2767_v3  ;;  %v2770_v59 = vsel %vm477_vm0, %v520_v56, %v521_v50  ;;  %v2776_v2 = vsel %vm477_vm0, 0.0, %v520_v56  ;;  %v2791_v56 = vsel %vm477_vm0, %v518_v19, 0.0 }
  0x53   : > { %4603 = vst [vmem:[#allocation38_spill] sm:$0xff] %v2770_v59  ;;  %v724_v58 = vrot.slane %v2770_v59, 1  ;;  %v723_v50 = vrot.slane %v2776_v2, 1  ;;  %v721_v18 = vrot.slane %v2791_v56, 1 }
  0x54   : > { %775 = vrot.lane.b32.xlu0 %v2751_v57, %s2389_s29  ;;  %v726_v57 = vrot.slane %v2773_v33, 1 }
  0x55   : > { %v2800_v35 = vsel %vm652_vm1, %v723_v50, %v724_v58  ;;  %v2813_v19 = vsel %vm652_vm1, %v719_v1, %v721_v18 }
  0x56   : > { %4607 = vst [vmem:[#allocation42_spill] sm:$0xff] %v2813_v19 }
  0x58   : > { %785 = vrot.lane.b32.xlu2 %v2763_v49, %s2389_s29  ;;  %v2796_v49 = vsel %vm652_vm1, %v724_v58, %v726_v57  ;;  %v830_v57 = vrot.slane %v2497_v29, 2  ;;  %v731_v58 = vrot.slane %v2806_v5, 1 }
  0x59   : > { %783 = vrot.lane.b32.xlu1 %v2767_v3, %s2389_s29  ;;  %4605 = vst [vmem:[#allocation40_spill] sm:$0xff] %v2796_v49  ;;  %v2803_v3 = vsel %vm477_vm0, %v523_v20, %v524_v42  ;;  %v2820_v42 = vsel %vm477_vm0, 0.0, %v523_v20  ;;  %v836_v20 = vrot.slane %v2473_v17, 2 }
  0x5a   : > { %4606 = vst [vmem:[#allocation41_spill] sm:$0xff] %v2803_v3  ;;  %v729_v38 = vrot.slane %v2803_v3, 1  ;;  %v832_v50 = vsel %vm829_vm2, %v830_v57, %v831_v37  ;;  %v728_v1 = vrot.slane %v2820_v42, 1  ;;  %v835_v57 = vrot.slane %v2468_v14, 2 }
  0x5b   : > { %4608 = vst [vmem:[#allocation43_spill] sm:$0xff] %v2820_v42 }
  0x5c   : > { %781 = vrot.lane.b32.xlu0 %v2785_v39, %s2389_s29  ;;  %v2827_v18 = vsel %vm652_vm1, %v729_v38, %v731_v58  ;;  %v2833_v29 = vsel %vm652_vm1, %v728_v1, %v729_v38  ;;  %v2841_v58 = vsel %vm829_vm2, %v836_v20, %v838_v28  ;;  %v845_v38 = vrot.slane %v2541_v54, 2 }
  0x5d   : > { %4609 = vst [vmem:[#allocation44_spill] sm:$0xff] %v2827_v18  ;;  %v846_v1 = vrot.slane %v2526_v47, 2  ;;  %v841_v28 = vrot.slane %v2462_v12, 2 }
  0x5e   : > { %4610 = vst [vmem:[#allocation45_spill] sm:$0xff] %v2833_v29 }
  0x5f   : > { %4611 = vst [vmem:[#allocation46_spill] sm:$0xff] %v2841_v58 }
  0x60   : > { %791 = vrot.lane.b32.xlu2 %v2796_v49, %s2389_s29  ;;  %v2845_v49 = vsel %vm829_vm2, %v835_v57, %v836_v20  ;;  %v2860_v20 = vsel %vm829_vm2, %v845_v38, %v846_v1  ;;  %v840_v57 = vrot.slane %v2465_v13, 2  ;;  %v850_v38 = vrot.slane %v2523_v46, 2 }
  0x61   : > { %789 = vrot.lane.b32.xlu1 %v2800_v35, %s2389_s29  ;;  %4613 = vst [vmem:[#allocation48_spill] sm:$0xff] %v2860_v20 }
  0x64   : > { %787 = vrot.lane.b32.xlu0 %v2813_v19, %s2389_s29 }
  0x68   : > { %910 = vrot.lane.b32.xlu2 %v832_v50, %s2390_s30  ;;  %v833_v50 = vrot.slane %v2508_v36, 2  ;;  %v843_v36 = vrot.slane %v2478_v22, 2  ;;  %v851_v22 = vrot.slane %v2520_v45, 2 }
  0x69   : > { %795 = vrot.lane.b32.xlu1 %v2827_v18, %s2389_s29 }
  0x6a   : > { %v834_v24 = vsel %vm829_vm2, %v831_v37, %v833_v50  ;;  %v2871_v37 = vsel %vm829_vm2, %v840_v57, %v841_v28  ;;  %v853_v50 = vrot.slane %v2577_v9, 2  ;;  %v861_v57 = vrot.slane %v2596_v30, 2 }
  0x6c   : > { %793 = vrot.lane.b32.xlu0 %v2833_v29, %s2389_s29  ;;  %s377_s29 = scalar_lea.vmem %s4446_s2, %s2314_s26 }
  0x70   : > { %916 = vrot.lane.b32.xlu2 %v2841_v58, %s2390_s30  ;;  %v2864_v58 = vsel %vm829_vm2, %v841_v28, %v843_v36  ;;  %v2881_v36 = vsel %vm829_vm2, %v851_v22, %v853_v50  ;;  %v860_v28 = vrot.slane %v2614_v40, 2 }
  0x71   : > { %914 = vrot.lane.b32.xlu1 %v2845_v49, %s2390_s30  ;;  %4614 = vst [vmem:[#allocation49_spill] sm:$0xff] %v2864_v58 }
  0x72   : > { %v2854_v29 = vpop.permute.xlu2 %741  ;;  %4616 = vst [vmem:[#allocation51_spill] sm:$0xff] %v2881_v36 }
  0x73   : > { %4612 = vst [vmem:[#allocation47_spill] sm:$0xff] %v2854_v29  ;;  %v848_v29 = vrot.slane %v2529_v48, 2  ;;  %v856_v48 = vrot.slane %v2554_v62, 2 }
  0x74   : > { %912 = vrot.lane.b32.xlu0 %v834_v24, %s2390_s30 }
  0x75   : > { %v2892_v9 = vsel %vm829_vm2, %v846_v1, %v848_v29 }
  0x76   : > { %4618 = vst [vmem:[#allocation53_spill] sm:$0xff] %v2892_v9 }
  0x78   : > { %922 = vrot.lane.b32.xlu2 %v2860_v20, %s2390_s30  ;;  %v2885_v20 = vsel %vm829_vm2, %v850_v38, %v851_v22  ;;  %v858_v22 = vrot.slane %v2557_v63, 2  ;;  %v2903_v38 = vsel %vm829_vm2, %v860_v28, %v861_v57  ;;  %v866_v63 = vrot.slane %v2589_v21, 2 }
  0x79   : > { %920 = vrot.lane.b32.xlu1 %v2864_v58, %s2390_s30  ;;  %4617 = vst [vmem:[#allocation52_spill] sm:$0xff] %v2885_v20 }
  0x7a   : > { %v2875_v24 = vpop.permute.xlu2 %743  ;;  %4620 = vst [vmem:[#allocation55_spill] sm:$0xff] %v2903_v38  ;;  %v2907_v29 = vsel %vm829_vm2, %v856_v48, %v858_v22 }
  0x7b   : > { %4615 = vst [vmem:[#allocation50_spill] sm:$0xff] %v2875_v24  ;;  %v855_v24 = vrot.slane %v2560_v0, 2 }
  0x7c   : > { %918 = vrot.lane.b32.xlu0 %v2871_v37, %s2390_s30  ;;  %4621 = vst [vmem:[#allocation56_spill] sm:$0xff] %v2907_v29 }
  0x7d   : > { %v2914_v1 = vsel %vm829_vm2, %v855_v24, %v856_v48 }
  0x7e   : > { %4622 = vst [vmem:[#allocation57_spill] sm:$0xff] %v2914_v1 }
  0x80   : > { %928 = vrot.lane.b32.xlu2 %v2881_v36, %s2390_s30  ;;  %v865_v36 = vrot.slane %v2592_v25, 2 }
  0x81   : > { %926 = vrot.lane.b32.xlu1 %v2885_v20, %s2390_s30 }
  0x82   : > { %v2896_v50 = vpop.permute.xlu2 %749  ;;  %v2932_v48 = vsel %vm829_vm2, %v865_v36, %v866_v63  ;;  %v873_v36 = vrot.slane %v2629_v52, 2 }
  0x83   : > { %4619 = vst [vmem:[#allocation54_spill] sm:$0xff] %v2896_v50  ;;  %v868_v50 = vrot.slane %v2649_v4, 2 }
  0x84   : > { %924 = vrot.lane.b32.xlu0 %v2892_v9, %s2390_s30  ;;  %4627 = vst [vmem:[#allocation62_spill] sm:$0xff] %v2932_v48 }
  0x85   : > { %v2926_v22 = vsel %vm829_vm2, %v866_v63, %v868_v50  ;;  %v876_v50 = vrot.slane %v2667_v32, 2 }
  0x86   : > { %4625 = vst [vmem:[#allocation60_spill] sm:$0xff] %v2926_v22 }
  0x88   : > { %934 = vrot.lane.b32.xlu2 %v2903_v38, %s2390_s30  ;;  %v863_v38 = vrot.slane %v2599_v31, 2  ;;  %v871_v31 = vrot.slane %v2626_v51, 2 }
  0x89   : > { %932 = vrot.lane.b32.xlu1 %v2907_v29, %s2390_s30 }
  0x8a   : > { %v2918_v28 = vpop.permute.xlu2 %755  ;;  %v2939_v4 = vsel %vm829_vm2, %v861_v57, %v863_v38  ;;  %v870_v57 = vrot.slane %v2632_v53, 2 }
  0x8b   : > { %4623 = vst [vmem:[#allocation58_spill] sm:$0xff] %v2918_v28  ;;  %v2921_v9 = vpop.permute.xlu1 %737  ;;  %v875_v28 = vrot.slane %v2684_v55, 2 }
  0x8c   : > { %4624 = vst [vmem:[#allocation59_spill] sm:$0xff] %v2921_v9  ;;  %930 = vrot.lane.b32.xlu0 %v2914_v1, %s2390_s30  ;;  %v2965_v52 = vsel %vm829_vm2, %v870_v57, %v871_v31 }
  0x8d   : > { %4628 = vst [vmem:[#allocation63_spill] sm:$0xff] %v2939_v4 }
  0x8e   : > { %v2929_v24 = vpop.permute.xlu0 %733  ;;  %4634 = vst [vmem:[#allocation69_spill] sm:$0xff] %v2965_v52 }
  0x8f   : > { %4626 = vst [vmem:[#allocation61_spill] sm:$0xff] %v2929_v24  ;;  %v2952_v24 = vsel %vm829_vm2, %v875_v28, %v876_v50  ;;  %v883_v28 = vrot.slane %v2721_v43, 2 }
  0x90   : > { %940 = vrot.lane.b32.xlu2 %v2926_v22, %s2390_s30  ;;  %4631 = vst [vmem:[#allocation66_spill] sm:$0xff] %v2952_v24  ;;  %v2958_v22 = vsel %vm829_vm2, %v871_v31, %v873_v36 }
  0x91   : > { %938 = vrot.lane.b32.xlu1 %v2932_v48, %s2390_s30  ;;  %4633 = vst [vmem:[#allocation68_spill] sm:$0xff] %v2958_v22 }
  0x92   : > { %v2943_v9 = vpop.permute.xlu2 %761 }
  0x93   : > { %4629 = vst [vmem:[#allocation64_spill] sm:$0xff] %v2943_v9  ;;  %v2947_v63 = vpop.permute.xlu1 %739 }
  0x94   : > { %4630 = vst [vmem:[#allocation65_spill] sm:$0xff] %v2947_v63  ;;  %936 = vrot.lane.b32.xlu0 %v2939_v4, %s2390_s30  ;;  %v881_v63 = vrot.slane %v2661_v26, 2 }
  0x96   : > { %v2955_v38 = vpop.permute.xlu0 %735  ;;  %v2977_v36 = vsel %vm829_vm2, %v881_v63, %v883_v28  ;;  %v891_v28 = vrot.slane %v2739_v16, 2 }
  0x97   : > { %4632 = vst [vmem:[#allocation67_spill] sm:$0xff] %v2955_v38  ;;  %v880_v38 = vrot.slane %v2664_v11, 2 }
  0x98   : > { %946 = vrot.lane.b32.xlu2 %v2952_v24, %s2390_s30  ;;  %4637 = vst [vmem:[#allocation72_spill] sm:$0xff] %v2977_v36  ;;  %v878_v24 = vrot.slane %v2670_v34, 2  ;;  %v886_v34 = vrot.slane %v2698_v6, 2 }
  0x99   : > { %944 = vrot.lane.b32.xlu1 %v2958_v22, %s2390_s30  ;;  %v2983_v57 = vsel %vm829_vm2, %v880_v38, %v881_v63  ;;  %v888_v63 = vrot.slane %v2701_v8, 2 }
  0x9a   : > { %v2969_v9 = vpop.permute.xlu2 %767  ;;  %v2990_v43 = vsel %vm829_vm2, %v876_v50, %v878_v24  ;;  %v885_v24 = vrot.slane %v2704_v10, 2 }
  0x9b   : > { %4635 = vst [vmem:[#allocation70_spill] sm:$0xff] %v2969_v9  ;;  %v2972_v4 = vpop.permute.xlu1 %747 }
  0x9c   : > { %4636 = vst [vmem:[#allocation71_spill] sm:$0xff] %v2972_v4  ;;  %942 = vrot.lane.b32.xlu0 %v2965_v52, %s2390_s30  ;;  %v890_v4 = vrot.slane %v2758_v41, 2  ;;  %v3016_v8 = vsel %vm829_vm2, %v885_v24, %v886_v34 }
  0x9d   : > { %4639 = vst [vmem:[#allocation74_spill] sm:$0xff] %v2990_v43 }
  0x9e   : > { %v2980_v31 = vpop.permute.xlu0 %745  ;;  %4645 = vst [vmem:[#allocation80_spill] sm:$0xff] %v3016_v8 }
  0x9f   : > { %4638 = vst [vmem:[#allocation73_spill] sm:$0xff] %v2980_v31  ;;  %v3003_v31 = vsel %vm829_vm2, %v890_v4, %v891_v28  ;;  %v898_v4 = vrot.slane %v2791_v56, 2 }
  0xa0   : > { %952 = vrot.lane.b32.xlu2 %v2977_v36, %s2390_s30  ;;  %4642 = vst [vmem:[#allocation77_spill] sm:$0xff] %v3003_v31  ;;  %v3009_v36 = vsel %vm829_vm2, %v886_v34, %v888_v63 }
  0xa1   : > { %950 = vrot.lane.b32.xlu1 %v2983_v57, %s2390_s30  ;;  %4644 = vst [vmem:[#allocation79_spill] sm:$0xff] %v3009_v36 }
  0xa2   : > { %v2994_v9 = vpop.permute.xlu2 %773 }
  0xa3   : > { %4640 = vst [vmem:[#allocation75_spill] sm:$0xff] %v2994_v9  ;;  %v2998_v38 = vpop.permute.xlu1 %753 }
  0xa4   : > { %4641 = vst [vmem:[#allocation76_spill] sm:$0xff] %v2998_v38  ;;  %948 = vrot.lane.b32.xlu0 %v2990_v43, %s2390_s30  ;;  %v896_v38 = vrot.slane %v2733_v60, 2 }
  0xa6   : > { %v3006_v50 = vpop.permute.xlu0 %751  ;;  %v3028_v63 = vsel %vm829_vm2, %v896_v38, %v898_v4  ;;  %v906_v4 = vrot.slane %v2803_v3, 2 }
  0xa7   : > { %4643 = vst [vmem:[#allocation78_spill] sm:$0xff] %v3006_v50  ;;  %v895_v50 = vrot.slane %v2736_v7, 2 }
  0xa8   : > { %958 = vrot.lane.b32.xlu2 %v3003_v31, %s2390_s30  ;;  %4648 = vst [vmem:[#allocation83_spill] sm:$0xff] %v3028_v63  ;;  %v893_v31 = vrot.slane %v2742_v15, 2  ;;  %v901_v15 = vrot.slane %v2770_v59, 2 }
  0xa9   : > { %956 = vrot.lane.b32.xlu1 %v3009_v36, %s2390_s30  ;;  %v3034_v24 = vsel %vm829_vm2, %v895_v50, %v896_v38  ;;  %v903_v38 = vrot.slane %v2773_v33, 2 }
  0xaa   : > { %v3020_v9 = vpop.permute.xlu2 %779  ;;  %4650 = vst [vmem:[#allocation85_spill] sm:$0xff] %v3034_v24  ;;  %v3041_v56 = vsel %vm829_vm2, %v891_v28, %v893_v31  ;;  %v900_v31 = vrot.slane %v2776_v2, 2 }
  0xab   : > { %4646 = vst [vmem:[#allocation81_spill] sm:$0xff] %v3020_v9  ;;  %v3023_v43 = vpop.permute.xlu1 %759  ;;  %v905_v9 = vrot.slane %v2820_v42, 2 }
  0xac   : > { %4647 = vst [vmem:[#allocation82_spill] sm:$0xff] %v3023_v43  ;;  %954 = vrot.lane.b32.xlu0 %v3016_v8, %s2390_s30  ;;  %v3067_v33 = vsel %vm829_vm2, %v900_v31, %v901_v15 }
  0xad   : > { %4651 = vst [vmem:[#allocation86_spill] sm:$0xff] %v3041_v56 }
  0xae   : > { %v3031_v34 = vpop.permute.xlu0 %757 }
  0xaf   : > { %4649 = vst [vmem:[#allocation84_spill] sm:$0xff] %v3031_v34  ;;  %v3054_v34 = vsel %vm829_vm2, %v905_v9, %v906_v4 }
  0xb0   : > { %964 = vrot.lane.b32.xlu2 %v3028_v63, %s2390_s30  ;;  %4654 = vst [vmem:[#allocation89_spill] sm:$0xff] %v3054_v34  ;;  %v3060_v63 = vsel %vm829_vm2, %v901_v15, %v903_v38 }
  0xb1   : > { %962 = vrot.lane.b32.xlu1 %v3034_v24, %s2390_s30 }
  0xb2   : > { %v3045_v43 = vpop.permute.xlu2 %785 }
  0xb3   : > { %4652 = vst [vmem:[#allocation87_spill] sm:$0xff] %v3045_v43  ;;  %v3049_v50 = vpop.permute.xlu1 %765 }
  0xb4   : > { %4653 = vst [vmem:[#allocation88_spill] sm:$0xff] %v3049_v50  ;;  %960 = vrot.lane.b32.xlu0 %v3041_v56, %s2390_s30  ;;  %v908_v50 = vrot.slane %v2806_v5, 2 }
  0xb6   : > { %v3057_v28 = vpop.permute.xlu0 %763  ;;  %v3083_v15 = vsel %vm829_vm2, %v906_v4, %v908_v50 }
  0xb7   : > { %4657 = vst [vmem:[#allocation92_spill] sm:$0xff] %v3083_v15 }
  0xb8   : > { %970 = vrot.lane.b32.xlu2 %v3054_v34, %s2390_s30 }
  0xb9   : > { %968 = vrot.lane.b32.xlu1 %v3060_v63, %s2390_s30 }
  0xba   : > { %v3069_v43 = vpop.permute.xlu2 %791 }
  0xbb   : > { %4655 = vst [vmem:[#allocation90_spill] sm:$0xff] %v3069_v43  ;;  %v3071_v9 = vpop.permute.xlu1 %771 }
  0xbc   : > { %4656 = vst [vmem:[#allocation91_spill] sm:$0xff] %v3071_v9  ;;  %966 = vrot.lane.b32.xlu0 %v3067_v33, %s2390_s30 }
  0xbe   : > { %v3076_v38 = vpop.permute.xlu0 %769 }
  0xc0   : > { %1009 = vrot.lane.b32.xlu2 %v2473_v17, %s2391_s6 }
  0xc1   : > { %1007 = vrot.lane.b32.xlu1 %v2468_v14, %s2391_s6 }
  0xc2   : > { %v3085_v31 = vpop.permute.xlu2 %910 }
  0xc3   : > { %4658 = vst [vmem:[#allocation93_spill] sm:$0xff] %v3085_v31  ;;  %v3087_v43 = vpop.permute.xlu1 %777 }
  0xc4   : > { %4659 = vst [vmem:[#allocation94_spill] sm:$0xff] %v3087_v43  ;;  %972 = vrot.lane.b32.xlu0 %v3083_v15, %s2390_s30 }
  0xc6   : > { %v3091_v5 = vpop.permute.xlu0 %775 }
  0xc8   : > { %1015 = vrot.lane.b32.xlu2 %v2541_v54, %s2391_s6 }
  0xc9   : > { %1013 = vrot.lane.b32.xlu1 %v2462_v12, %s2391_s6 }
  0xca   : > { %v3097_v17 = vpop.permute.xlu2 %916 }
  0xcb   : > { %4660 = vst [vmem:[#allocation95_spill] sm:$0xff] %v3097_v17  ;;  %v3099_v14 = vpop.permute.xlu1 %783 }
  0xcc   : > { %4661 = vst [vmem:[#allocation96_spill] sm:$0xff] %v3099_v14  ;;  %1011 = vrot.lane.b32.xlu0 %v2465_v13, %s2391_s6 }
  0xce   : > { %v3103_v4 = vpop.permute.xlu0 %781 }
  0xcf   : > { %4662 = vst [vmem:[#allocation97_spill] sm:$0xff] %v3103_v4  ;;  %v3191_v4 = vld [vmem:[%s2451_s25 + $0xf8] sm:$0xff] }
  0xd0   : > { %1021 = vrot.lane.b32.xlu2 %v2520_v45, %s2391_s6 }
  0xd1   : > { %1019 = vrot.lane.b32.xlu1 %v2523_v46, %s2391_s6 }
  0xd2   : > { %v3109_v50 = vpop.permute.xlu2 %922 }
  0xd3   : > { %4663 = vst [vmem:[#allocation98_spill] sm:$0xff] %v3109_v50  ;;  %v3111_v31 = vpop.permute.xlu1 %789 }
  0xd4   : > { %4664 = vst [vmem:[#allocation99_spill] sm:$0xff] %v3111_v31  ;;  %1017 = vrot.lane.b32.xlu0 %v2526_v47, %s2391_s6 }
  0xd6   : > { %v3115_v17 = vpop.permute.xlu0 %787 }
  0xd7   : > { %4665 = vst [vmem:[#allocation100_spill] sm:$0xff] %v3115_v17 }
  0xd8   : > { %1027 = vrot.lane.b32.xlu2 %v2614_v40, %s2391_s6 }
  0xd9   : > { %1025 = vrot.lane.b32.xlu1 %v2554_v62, %s2391_s6 }
  0xda   : > { %v3121_v14 = vpop.permute.xlu2 %928 }
  0xdb   : > { %4666 = vst [vmem:[#allocation101_spill] sm:$0xff] %v3121_v14  ;;  %v3123_v43 = vpop.permute.xlu1 %795 }
  0xdc   : > { %4667 = vst [vmem:[#allocation102_spill] sm:$0xff] %v3123_v43  ;;  %1023 = vrot.lane.b32.xlu0 %v2560_v0, %s2391_s6 }
  0xde   : > { %v3127_v50 = vpop.permute.xlu0 %793 }
  0xdf   : > { %4668 = vst [vmem:[#allocation103_spill] sm:$0xff] %v3127_v50 }
  0xe0   : > { %1033 = vrot.lane.b32.xlu2 %v2589_v21, %s2391_s6 }
  0xe1   : > { %1031 = vrot.lane.b32.xlu1 %v2592_v25, %s2391_s6 }
  0xe2   : > { %v3133_v31 = vpop.permute.xlu2 %934 }
  0xe3   : > { %4669 = vst [vmem:[#allocation104_spill] sm:$0xff] %v3133_v31  ;;  %v3135_v9 = vpop.permute.xlu1 %914 }
  0xe4   : > { %4670 = vst [vmem:[#allocation105_spill] sm:$0xff] %v3135_v9  ;;  %1029 = vrot.lane.b32.xlu0 %v2596_v30, %s2391_s6 }
  0xe6   : > { %v3139_v14 = vpop.permute.xlu0 %912 }
  0xe7   : > { %4671 = vst [vmem:[#allocation106_spill] sm:$0xff] %v3139_v14 }
  0xe8   : > { %1039 = vrot.lane.b32.xlu2 %v2684_v55, %s2391_s6 }
  0xe9   : > { %1037 = vrot.lane.b32.xlu1 %v2626_v51, %s2391_s6 }
  0xea   : > { %v3145_v43 = vpop.permute.xlu2 %940 }
  0xeb   : > { %v3147_v50 = vpop.permute.xlu1 %920 }
  0xec   : > { %4672 = vst [vmem:[#allocation107_spill] sm:$0xff] %v3147_v50  ;;  %1035 = vrot.lane.b32.xlu0 %v2632_v53, %s2391_s6 }
  0xee   : > { %v3151_v31 = vpop.permute.xlu0 %918 }
  0xef   : > { %4673 = vst [vmem:[#allocation108_spill] sm:$0xff] %v3151_v31 }
  0xf0   : > { %1045 = vrot.lane.b32.xlu2 %v2661_v26, %s2391_s6 }
  0xf1   : > { %1043 = vrot.lane.b32.xlu1 %v2664_v11, %s2391_s6 }
  0xf2   : > { %v3157_v9 = vpop.permute.xlu2 %946 }
  0xf3   : > { %v3159_v14 = vpop.permute.xlu1 %926 }
  0xf4   : > { %4674 = vst [vmem:[#allocation109_spill] sm:$0xff] %v3159_v14  ;;  %1041 = vrot.lane.b32.xlu0 %v2667_v32, %s2391_s6 }
  0xf6   : > { %v3163_v50 = vpop.permute.xlu0 %924 }
  0xf7   : > { %4675 = vst [vmem:[#allocation110_spill] sm:$0xff] %v3163_v50 }
  0xf8   : > { %1051 = vrot.lane.b32.xlu2 %v2758_v41, %s2391_s6 }
  0xf9   : > { %1049 = vrot.lane.b32.xlu1 %v2698_v6, %s2391_s6 }
  0xfa   : > { %v3169_v31 = vpop.permute.xlu2 %952 }
  0xfb   : > { %v3171_v17 = vpop.permute.xlu1 %932 }
  0xfc   : > { %4676 = vst [vmem:[#allocation111_spill] sm:$0xff] %v3171_v17  ;;  %1047 = vrot.lane.b32.xlu0 %v2704_v10, %s2391_s6  ;;  %v439_v17 = vld [vmem:[%s2451_s25 + $0xf0] sm:$0xff] }
  0xfe   : > { %v3175_v14 = vpop.permute.xlu0 %930 }
  0xff   : > { %4677 = vst [vmem:[#allocation112_spill] sm:$0xff] %v3175_v14  ;;  %v526_v14 = vrot.slane %v439_v17, 7 }
 0x100   : > { %1057 = vrot.lane.b32.xlu2 %v2733_v60, %s2391_s6 }
 0x101   : > { %1055 = vrot.lane.b32.xlu1 %v2736_v7, %s2391_s6  ;;  %v4535_v7 = vrot.slane %v3191_v4, 7 }
 0x102   : > { %v3181_v50 = vpop.permute.xlu2 %958 }
 0x103   : > { %v3183_v41 = vpop.permute.xlu1 %938 }
 0x104   : > { %4678 = vst [vmem:[#allocation113_spill] sm:$0xff] %v3183_v41  ;;  %1053 = vrot.lane.b32.xlu0 %v2739_v16, %s2391_s6  ;;  %v3207_v16 = vsel %vm477_vm0, %v526_v14, %v4535_v7 }
 0x105   : > { %4682 = vst [vmem:[#allocation117_spill] sm:$0xff] %v3207_v16 }
 0x106   : > { %v3187_v6 = vpop.permute.xlu0 %936 }
 0x107   : > { %4679 = vst [vmem:[#allocation114_spill] sm:$0xff] %v3187_v6 }
 0x108   : > { %1063 = vrot.lane.b32.xlu2 %v2820_v42, %s2391_s6  ;;  %v3212_v42 = vsel %vm477_vm0, 0.0, %v526_v14 }
 0x109   : > { %1061 = vrot.lane.b32.xlu1 %v2770_v59, %s2391_s6  ;;  %4684 = vst [vmem:[#allocation119_spill] sm:$0xff] %v3212_v42 }
 0x10a   : > { %v3198_v60 = vpop.permute.xlu2 %964 }
 0x10b   : > { %4680 = vst [vmem:[#allocation115_spill] sm:$0xff] %v3198_v60  ;;  %v3200_v41 = vpop.permute.xlu1 %944 }
 0x10c   : > { %4681 = vst [vmem:[#allocation116_spill] sm:$0xff] %v3200_v41  ;;  %1059 = vrot.lane.b32.xlu0 %v2776_v2, %s2391_s6  ;;  %v4711_v41 = vld [vmem:[#allocation19_spill] sm:$0xff] }
 0x10e   : > { %v3209_v6 = vpop.permute.xlu0 %942 }
 0x10f   : > { %4683 = vst [vmem:[#allocation118_spill] sm:$0xff] %v3209_v6 }
 0x110   : > { %1069 = vrot.lane.b32.xlu2 %v3207_v16, %s2391_s6 }
 0x111   : > { %1067 = vrot.lane.b32.xlu1 %v3212_v42, %s2391_s6 }
 0x112   : > { %v3218_v17 = vpop.permute.xlu2 %970 }
 0x113   : > { %4685 = vst [vmem:[#allocation120_spill] sm:$0xff] %v3218_v17  ;;  %v3220_v59 = vpop.permute.xlu1 %950 }
 0x114   : > { %4686 = vst [vmem:[#allocation121_spill] sm:$0xff] %v3220_v59  ;;  %1065 = vrot.lane.b32.xlu0 %v2803_v3, %s2391_s6  ;;  %v4691_v3 = vld [vmem:[#allocation14_spill] sm:$0xff] }
 0x116   : > { %v3224_v7 = vpop.permute.xlu0 %948 }
 0x117   : > { %4687 = vst [vmem:[#allocation122_spill] sm:$0xff] %v3224_v7 }
 0x118   : > { %1113 = vrot.lane.b32.xlu2 %v2481_v23, %s2392_s7 }
 0x119   : > { %1111 = vrot.lane.b32.xlu1 %v2517_v44, %s2392_s7  ;;  %v4694_v44 = vld [vmem:[#allocation7_spill] sm:$0xff] }
 0x11a   : > { %v3230_v14 = vpop.permute.xlu2 %1009 }
 0x11b   : > { %4688 = vst [vmem:[#allocation123_spill] sm:$0xff] %v3230_v14  ;;  %v3232_v6 = vpop.permute.xlu1 %956 }
 0x11c   : > { %4689 = vst [vmem:[#allocation124_spill] sm:$0xff] %v3232_v6  ;;  %1109 = vrot.lane.b32.xlu0 %v2491_v27, %s2392_s7  ;;  %v4696_v6 = vld [vmem:[#allocation16_spill] sm:$0xff]  ;;  %v4697_v27 = vld [vmem:[#allocation17_spill] sm:$0xff] }
 0x11e   : > { %v3236_v59 = vpop.permute.xlu0 %954 }
 0x11f   : > { %4690 = vst [vmem:[#allocation125_spill] sm:$0xff] %v3236_v59 }
 0x120   : > { %1119 = vrot.lane.b32.xlu2 %v2551_v61, %s2392_s7 }
 0x121   : > { %1117 = vrot.lane.b32.xlu1 %v4691_v3, %s2392_s7  ;;  %v4700_v3 = vld [vmem:[#allocation11_spill] sm:$0xff] }
 0x122   : > { %v3242_v7 = vpop.permute.xlu2 %1015 }
 0x123   : > { %4692 = vst [vmem:[#allocation126_spill] sm:$0xff] %v3242_v7  ;;  %v3244_v17 = vpop.permute.xlu1 %962 }
 0x124   : > { %4693 = vst [vmem:[#allocation127_spill] sm:$0xff] %v3244_v17  ;;  %1115 = vrot.lane.b32.xlu0 %v4694_v44, %s2392_s7  ;;  %v4702_v17 = vld [vmem:[#allocation20_spill] sm:$0xff] }
 0x126   : > { %v3248_v14 = vpop.permute.xlu0 %960 }
 0x127   : > { %4695 = vst [vmem:[#allocation128_spill] sm:$0xff] %v3248_v14  ;;  %v4703_v14 = vld [vmem:[#allocation21_spill] sm:$0xff] }
 0x128   : > { %1125 = vrot.lane.b32.xlu2 %v4696_v6, %s2392_s7 }
 0x129   : > { %1123 = vrot.lane.b32.xlu1 %v4697_v27, %s2392_s7  ;;  %v4706_v27 = vld [vmem:[#allocation15_spill] sm:$0xff] }
 0x12a   : > { %v3254_v59 = vpop.permute.xlu2 %1021 }
 0x12b   : > { %4698 = vst [vmem:[#allocation129_spill] sm:$0xff] %v3254_v59  ;;  %v3256_v61 = vpop.permute.xlu1 %968 }
 0x12c   : > { %4699 = vst [vmem:[#allocation130_spill] sm:$0xff] %v3256_v61  ;;  %1121 = vrot.lane.b32.xlu0 %v4700_v3, %s2392_s7  ;;  %v4708_v61 = vld [vmem:[#allocation23_spill] sm:$0xff]  ;;  %v4709_v3 = vld [vmem:[#allocation24_spill] sm:$0xff] }
 0x12e   : > { %v3260_v7 = vpop.permute.xlu0 %966 }
 0x12f   : > { %4701 = vst [vmem:[#allocation131_spill] sm:$0xff] %v3260_v7 }
 0x130   : > { %1131 = vrot.lane.b32.xlu2 %v4702_v17, %s2392_s7 }
 0x131   : > { %1129 = vrot.lane.b32.xlu1 %v4703_v14, %s2392_s7 }
 0x132   : > { %v3266_v44 = vpop.permute.xlu2 %1027 }
 0x133   : > { %4704 = vst [vmem:[#allocation21_spill] sm:$0xff] %v3266_v44  ;;  %v3268_v6 = vpop.permute.xlu1 %1007 }
 0x134   : > { %4705 = vst [vmem:[#allocation132_spill] sm:$0xff] %v3268_v6  ;;  %1127 = vrot.lane.b32.xlu0 %v4706_v27, %s2392_s7  ;;  %v4713_v6 = vld [vmem:[#allocation26_spill] sm:$0xff]  ;;  %v4714_v27 = vld [vmem:[#allocation28_spill] sm:$0xff] }
 0x136   : > { %v3272_v59 = vpop.permute.xlu0 %972 }
 0x137   : > { %4707 = vst [vmem:[#allocation133_spill] sm:$0xff] %v3272_v59 }
 0x138   : > { %1137 = vrot.lane.b32.xlu2 %v4708_v61, %s2392_s7 }
 0x139   : > { %1135 = vrot.lane.b32.xlu1 %v4709_v3, %s2392_s7  ;;  %v4717_v3 = vld [vmem:[#allocation22_spill] sm:$0xff] }
 0x13a   : > { %v3278_v7 = vpop.permute.xlu2 %1033 }
 0x13b   : > { %v3280_v17 = vpop.permute.xlu1 %1013 }
 0x13c   : > { %4710 = vst [vmem:[#allocation134_spill] sm:$0xff] %v3280_v17  ;;  %1133 = vrot.lane.b32.xlu0 %v4711_v41, %s2392_s7  ;;  %v4719_v17 = vld [vmem:[#allocation30_spill] sm:$0xff] }
 0x13e   : > { %v3284_v44 = vpop.permute.xlu0 %1011 }
 0x13f   : > { %4712 = vst [vmem:[#allocation135_spill] sm:$0xff] %v3284_v44  ;;  %v4720_v44 = vld [vmem:[#allocation34_spill] sm:$0xff] }
 0x140   : > { %1143 = vrot.lane.b32.xlu2 %v4713_v6, %s2392_s7 }
 0x141   : > { %1141 = vrot.lane.b32.xlu1 %v4714_v27, %s2392_s7  ;;  %v4723_v27 = vld [vmem:[#allocation25_spill] sm:$0xff] }
 0x142   : > { %v3290_v59 = vpop.permute.xlu2 %1039 }
 0x143   : > { %4715 = vst [vmem:[#allocation136_spill] sm:$0xff] %v3290_v59  ;;  %v3292_v61 = vpop.permute.xlu1 %1019 }
 0x144   : > { %4716 = vst [vmem:[#allocation137_spill] sm:$0xff] %v3292_v61  ;;  %1139 = vrot.lane.b32.xlu0 %v4717_v3, %s2392_s7  ;;  %v4725_v61 = vld [vmem:[#allocation37_spill] sm:$0xff] }
 0x146   : > { %v3296_v60 = vpop.permute.xlu0 %1017 }
 0x147   : > { %4718 = vst [vmem:[#allocation138_spill] sm:$0xff] %v3296_v60 }
 0x148   : > { %1149 = vrot.lane.b32.xlu2 %v4719_v17, %s2392_s7  ;;  %v4728_v17 = vld [vmem:[#allocation29_spill] sm:$0xff] }
 0x149   : > { %1147 = vrot.lane.b32.xlu1 %v4720_v44, %s2392_s7  ;;  %v4735_v44 = vld [vmem:[#allocation40_spill] sm:$0xff] }
 0x14a   : > { %v3302_v41 = vpop.permute.xlu2 %1045 }
 0x14b   : > { %4721 = vst [vmem:[#allocation139_spill] sm:$0xff] %v3302_v41  ;;  %v3304_v6 = vpop.permute.xlu1 %1025 }
 0x14c   : > { %4722 = vst [vmem:[#allocation140_spill] sm:$0xff] %v3304_v6  ;;  %1145 = vrot.lane.b32.xlu0 %v4723_v27, %s2392_s7 }
 0x14e   : > { %v3308_v59 = vpop.permute.xlu0 %1023 }
 0x14f   : > { %4724 = vst [vmem:[#allocation25_spill] sm:$0xff] %v3308_v59  ;;  %v4731_v59 = vld [vmem:[#allocation36_spill] sm:$0xff] }
 0x150   : > { %1155 = vrot.lane.b32.xlu2 %v4725_v61, %s2392_s7 }
 0x151   : > { %1153 = vrot.lane.b32.xlu1 %v2785_v39, %s2392_s7 }
 0x152   : > { %v3314_v3 = vpop.permute.xlu2 %1051 }
 0x153   : > { %4726 = vst [vmem:[#allocation141_spill] sm:$0xff] %v3314_v3  ;;  %v3316_v60 = vpop.permute.xlu1 %1031 }
 0x154   : > { %4727 = vst [vmem:[#allocation142_spill] sm:$0xff] %v3316_v60  ;;  %1151 = vrot.lane.b32.xlu0 %v4728_v17, %s2392_s7  ;;  %v4732_v60 = vrot.slane %v3191_v4, 7 }
 0x156   : > { %v3320_v41 = vpop.permute.xlu0 %1029  ;;  %v3337_v17 = vsel %vm477_vm0, %v4732_v60, 0.0  ;;  %v1104_v60 = vrot.slane %v3212_v42, 1 }
 0x157   : > { %4729 = vst [vmem:[#allocation143_spill] sm:$0xff] %v3320_v41  ;;  %v4733_v41 = vld [vmem:[#allocation45_spill] sm:$0xff]  ;;  %v1107_v3 = vrot.slane %v3337_v17, 1 }
 0x158   : > { %1161 = vrot.lane.b32.xlu2 %v2800_v35, %s2392_s7 }
 0x159   : > { %1159 = vrot.lane.b32.xlu1 %v2813_v19, %s2392_s7 }
 0x15a   : > { %v3326_v6 = vpop.permute.xlu2 %1057 }
 0x15b   : > { %4730 = vst [vmem:[#allocation144_spill] sm:$0xff] %v3326_v6  ;;  %v3328_v61 = vpop.permute.xlu1 %1037  ;;  %v1105_v6 = vrot.slane %v3207_v16, 1 }
 0x15c   : > { %1157 = vrot.lane.b32.xlu0 %v4731_v59, %s2392_s7 }
 0x15e   : > { %v3332_v39 = vpop.permute.xlu0 %1035 }
 0x160   : > { %1167 = vrot.lane.b32.xlu2 %v2827_v18, %s2392_s7  ;;  %v3355_v18 = vsel %vm652_vm1, %v1105_v6, %v1107_v3 }
 0x161   : > { %1165 = vrot.lane.b32.xlu1 %v4733_v41, %s2392_s7  ;;  %4737 = vst [vmem:[#allocation147_spill] sm:$0xff] %v3355_v18 }
 0x162   : > { %v3343_v19 = vpop.permute.xlu2 %1063 }
 0x163   : > { %4734 = vst [vmem:[#allocation145_spill] sm:$0xff] %v3343_v19  ;;  %v3347_v59 = vpop.permute.xlu1 %1043  ;;  %v3362_v19 = vsel %vm652_vm1, %v1104_v60, %v1105_v6  ;;  %v4741_v6 = vld [vmem:[#allocation46_spill] sm:$0xff] }
 0x164   : > { %1163 = vrot.lane.b32.xlu0 %v4735_v44, %s2392_s7  ;;  %4738 = vst [vmem:[#allocation148_spill] sm:$0xff] %v3362_v19 }
 0x166   : > { %v3352_v4 = vpop.permute.xlu0 %1041 }
 0x167   : > { %4736 = vst [vmem:[#allocation146_spill] sm:$0xff] %v3352_v4 }
 0x168   : > { %1210 = vrot.lane.b32.xlu2 %v2845_v49, %s2393_s8 }
 0x169   : > { %1171 = vrot.lane.b32.xlu1 %v3355_v18, %s2392_s7  ;;  %v4743_v18 = vld [vmem:[#allocation53_spill] sm:$0xff] }
 0x16a   : > { %v3364_v41 = vpop.permute.xlu2 %1069 }
 0x16b   : > { %4739 = vst [vmem:[#allocation149_spill] sm:$0xff] %v3364_v41  ;;  %v3366_v44 = vpop.permute.xlu1 %1049 }
 0x16c   : > { %1169 = vrot.lane.b32.xlu0 %v3362_v19, %s2392_s7 }
 0x16e   : > { %v3370_v4 = vpop.permute.xlu0 %1047 }
 0x170   : > { %1216 = vrot.lane.b32.xlu2 %v2864_v58, %s2393_s8  ;;  %v4745_v58 = vld [vmem:[#allocation48_spill] sm:$0xff] }
 0x171   : > { %1214 = vrot.lane.b32.xlu1 %v2871_v37, %s2393_s8 }
 0x172   : > { %v3376_v3 = vpop.permute.xlu2 %1113 }
 0x173   : > { %4740 = vst [vmem:[#allocation150_spill] sm:$0xff] %v3376_v3  ;;  %v3378_v49 = vpop.permute.xlu1 %1055 }
 0x174   : > { %1212 = vrot.lane.b32.xlu0 %v4741_v6, %s2393_s8 }
 0x176   : > { %v3382_v60 = vpop.permute.xlu0 %1053 }
 0x177   : > { %4742 = vst [vmem:[#allocation46_spill] sm:$0xff] %v3382_v60 }
 0x178   : > { %1222 = vrot.lane.b32.xlu2 %v2885_v20, %s2393_s8 }
 0x179   : > { %1220 = vrot.lane.b32.xlu1 %v4743_v18, %s2393_s8  ;;  %v4748_v18 = vld [vmem:[#allocation51_spill] sm:$0xff] }
 0x17a   : > { %v3388_v19 = vpop.permute.xlu2 %1119 }
 0x17b   : > { %4744 = vst [vmem:[#allocation151_spill] sm:$0xff] %v3388_v19  ;;  %v3390_v41 = vpop.permute.xlu1 %1061 }
 0x17c   : > { %1218 = vrot.lane.b32.xlu0 %v4745_v58, %s2393_s8  ;;  %v4750_v58 = vld [vmem:[#allocation63_spill] sm:$0xff] }
 0x17e   : > { %v3394_v3 = vpop.permute.xlu0 %1059 }
 0x17f   : > { %4746 = vst [vmem:[#allocation152_spill] sm:$0xff] %v3394_v3 }
 0x180   : > { %1228 = vrot.lane.b32.xlu2 %v2907_v29, %s2393_s8 }
 0x181   : > { %1226 = vrot.lane.b32.xlu1 %v2914_v1, %s2393_s8  ;;  %v4752_v1 = vld [vmem:[#allocation55_spill] sm:$0xff] }
 0x182   : > { %v3400_v6 = vpop.permute.xlu2 %1125 }
 0x183   : > { %4747 = vst [vmem:[#allocation153_spill] sm:$0xff] %v3400_v6  ;;  %v3402_v20 = vpop.permute.xlu1 %1067 }
 0x184   : > { %1224 = vrot.lane.b32.xlu0 %v4748_v18, %s2393_s8 }
 0x186   : > { %v3406_v19 = vpop.permute.xlu0 %1065 }
 0x187   : > { %4749 = vst [vmem:[#allocation154_spill] sm:$0xff] %v3406_v19  ;;  %v4755_v19 = vld [vmem:[#allocation60_spill] sm:$0xff] }
 0x188   : > { %1234 = vrot.lane.b32.xlu2 %v2932_v48, %s2393_s8 }
 0x189   : > { %1232 = vrot.lane.b32.xlu1 %v4750_v58, %s2393_s8 }
 0x18a   : > { %v3412_v3 = vpop.permute.xlu2 %1131 }
 0x18b   : > { %4751 = vst [vmem:[#allocation155_spill] sm:$0xff] %v3412_v3  ;;  %v3414_v29 = vpop.permute.xlu1 %1111 }
 0x18c   : > { %1230 = vrot.lane.b32.xlu0 %v4752_v1, %s2393_s8 }
 0x18e   : > { %v3418_v6 = vpop.permute.xlu0 %1109 }
 0x18f   : > { %4753 = vst [vmem:[#allocation55_spill] sm:$0xff] %v3418_v6  ;;  %v4757_v6 = vld [vmem:[#allocation74_spill] sm:$0xff] }
 0x190   : > { %1240 = vrot.lane.b32.xlu2 %v2958_v22, %s2393_s8 }
 0x191   : > { %1238 = vrot.lane.b32.xlu1 %v2965_v52, %s2393_s8  ;;  %v4759_v52 = vld [vmem:[#allocation66_spill] sm:$0xff] }
 0x192   : > { %v3424_v18 = vpop.permute.xlu2 %1137 }
 0x193   : > { %v3426_v48 = vpop.permute.xlu1 %1117 }
 0x194   : > { %4754 = vst [vmem:[#allocation156_spill] sm:$0xff] %v3426_v48  ;;  %1236 = vrot.lane.b32.xlu0 %v4755_v19, %s2393_s8 }
 0x196   : > { %v3430_v3 = vpop.permute.xlu0 %1115 }
 0x197   : > { %4756 = vst [vmem:[#allocation157_spill] sm:$0xff] %v3430_v3 }
 0x198   : > { %1246 = vrot.lane.b32.xlu2 %v2983_v57, %s2393_s8 }
 0x199   : > { %1244 = vrot.lane.b32.xlu1 %v4757_v6, %s2393_s8  ;;  %v4762_v6 = vld [vmem:[#allocation72_spill] sm:$0xff] }
 0x19a   : > { %v3436_v58 = vpop.permute.xlu2 %1143 }
 0x19b   : > { %v3438_v22 = vpop.permute.xlu1 %1123 }
 0x19c   : > { %4758 = vst [vmem:[#allocation158_spill] sm:$0xff] %v3438_v22  ;;  %1242 = vrot.lane.b32.xlu0 %v4759_v52, %s2393_s8 }
 0x19e   : > { %v3442_v60 = vpop.permute.xlu0 %1121 }
 0x19f   : > { %4760 = vst [vmem:[#allocation159_spill] sm:$0xff] %v3442_v60  ;;  %v4764_v60 = vld [vmem:[#allocation77_spill] sm:$0xff] }
 0x1a0   : > { %1252 = vrot.lane.b32.xlu2 %v3009_v36, %s2393_s8 }
 0x1a1   : > { %1250 = vrot.lane.b32.xlu1 %v3016_v8, %s2393_s8  ;;  %v4767_v8 = vld [vmem:[#allocation83_spill] sm:$0xff] }
 0x1a2   : > { %v3448_v19 = vpop.permute.xlu2 %1149 }
 0x1a3   : > { %v3450_v3 = vpop.permute.xlu1 %1129 }
 0x1a4   : > { %4761 = vst [vmem:[#allocation160_spill] sm:$0xff] %v3450_v3  ;;  %1248 = vrot.lane.b32.xlu0 %v4762_v6, %s2393_s8  ;;  %v1206_v3 = vrot.slane %v3207_v16, 2 }
 0x1a6   : > { %v3454_v48 = vpop.permute.xlu0 %1127 }
 0x1a7   : > { %4763 = vst [vmem:[#allocation72_spill] sm:$0xff] %v3454_v48  ;;  %v1205_v48 = vrot.slane %v3212_v42, 2 }
 0x1a8   : > { %1258 = vrot.lane.b32.xlu2 %v3034_v24, %s2393_s8 }
 0x1a9   : > { %1256 = vrot.lane.b32.xlu1 %v3041_v56, %s2393_s8 }
 0x1aa   : > { %v3460_v52 = vpop.permute.xlu2 %1155 }
 0x1ab   : > { %v3462_v36 = vpop.permute.xlu1 %1135 }
 0x1ac   : > { %1254 = vrot.lane.b32.xlu0 %v4764_v60, %s2393_s8  ;;  %v3481_v60 = vsel %vm829_vm2, %v1205_v48, %v1206_v3 }
 0x1ad   : > { %4768 = vst [vmem:[#allocation163_spill] sm:$0xff] %v3481_v60 }
 0x1ae   : > { %v3466_v22 = vpop.permute.xlu0 %1133 }
 0x1af   : > { %4765 = vst [vmem:[#allocation161_spill] sm:$0xff] %v3466_v22 }
 0x1b0   : > { %1264 = vrot.lane.b32.xlu2 %v3060_v63, %s2393_s8 }
 0x1b1   : > { %1262 = vrot.lane.b32.xlu1 %v3067_v33, %s2393_s8 }
 0x1b2   : > { %v3474_v24 = vpop.permute.xlu2 %1161 }
 0x1b3   : > { %4766 = vst [vmem:[#allocation162_spill] sm:$0xff] %v3474_v24  ;;  %v3476_v56 = vpop.permute.xlu1 %1141  ;;  %v1208_v24 = vrot.slane %v3337_v17, 2 }
 0x1b4   : > { %1260 = vrot.lane.b32.xlu0 %v4767_v8, %s2393_s8 }
 0x1b5   : > { %v3499_v48 = vsel %vm829_vm2, %v1206_v3, %v1208_v24 }
 0x1b6   : > { %v1140_v22 = vpop.permute.xlu0 %1139  ;;  %4769 = vst [vmem:[#allocation164_spill] sm:$0xff] %v3499_v48 }
 0x1b8   : > { %1270 = vrot.lane.b32.xlu2 %v3481_v60, %s2393_s8 }
 0x1b9   : > { %1268 = vrot.lane.b32.xlu1 %v3083_v15, %s2393_s8 }
 0x1ba   : > { %v3487_v16 = vpop.permute.xlu2 %1167 }
 0x1bb   : > { %v3489_v42 = vpop.permute.xlu1 %1147 }
 0x1bc   : > { %1266 = vrot.lane.b32.xlu0 %v3054_v34, %s2393_s8 }
 0x1be   : > { %v1146_v8 = vpop.permute.xlu0 %1145 }
 0x1c0   : > { %1309 = vrot.lane.b32.xlu2 %v2462_v12, %s2394_s9 }
 0x1c1   : > { %1307 = vrot.lane.b32.xlu1 %v2465_v13, %s2394_s9 }
 0x1c2   : > { %v3501_v60 = vpop.permute.xlu2 %1210 }
 0x1c3   : > { %4770 = vst [vmem:[#allocation165_spill] sm:$0xff] %v3501_v60  ;;  %v3503_v15 = vpop.permute.xlu1 %1153 }
 0x1c4   : > { %1272 = vrot.lane.b32.xlu0 %v3499_v48, %s2393_s8 }
 0x1c6   : > { %v1152_v34 = vpop.permute.xlu0 %1151 }
 0x1c8   : > { %1315 = vrot.lane.b32.xlu2 %v2523_v46, %s2394_s9 }
 0x1c9   : > { %1313 = vrot.lane.b32.xlu1 %v2526_v47, %s2394_s9 }
 0x1ca   : > { %v3511_v17 = vpop.permute.xlu2 %1216 }
 0x1cb   : > { %4771 = vst [vmem:[#allocation166_spill] sm:$0xff] %v3511_v17  ;;  %v3513_v12 = vpop.permute.xlu1 %1159 }
 0x1cc   : > { %1311 = vrot.lane.b32.xlu0 %v2541_v54, %s2394_s9 }
 0x1ce   : > { %v3517_v24 = vpop.permute.xlu0 %1157 }
 0x1d0   : > { %1321 = vrot.lane.b32.xlu2 %v2554_v62, %s2394_s9 }
 0x1d1   : > { %1319 = vrot.lane.b32.xlu1 %v2560_v0, %s2394_s9 }
 0x1d2   : > { %v3523_v3 = vpop.permute.xlu2 %1222 }
 0x1d3   : > { %4772 = vst [vmem:[#allocation167_spill] sm:$0xff] %v3523_v3  ;;  %v3525_v48 = vpop.permute.xlu1 %1165 }
 0x1d4   : > { %1317 = vrot.lane.b32.xlu0 %v2520_v45, %s2394_s9 }
 0x1d6   : > { %v3529_v46 = vpop.permute.xlu0 %1163 }
 0x1d8   : > { %1327 = vrot.lane.b32.xlu2 %v2592_v25, %s2394_s9 }
 0x1d9   : > { %1325 = vrot.lane.b32.xlu1 %v2596_v30, %s2394_s9 }
 0x1da   : > { %v3535_v54 = vpop.permute.xlu2 %1228 }
 0x1db   : > { %4773 = vst [vmem:[#allocation168_spill] sm:$0xff] %v3535_v54  ;;  %v3537_v62 = vpop.permute.xlu1 %1171 }
 0x1dc   : > { %4774 = vst [vmem:[#allocation169_spill] sm:$0xff] %v3537_v62  ;;  %1323 = vrot.lane.b32.xlu0 %v2614_v40, %s2394_s9  ;;  %v1622_v40 = vsel %vm1606_vm3, %v2589_v21, %v3057_v28 }
 0x1dd   : > { %v1655_v62 = vsel %vm1639_vm4, %v1622_v40, %v3145_v43 }
 0x1de   : > { %v3541_v3 = vpop.permute.xlu0 %1169 }
 0x1e0   : > { %1333 = vrot.lane.b32.xlu2 %v2626_v51, %s2394_s9 }
 0x1e1   : > { %1331 = vrot.lane.b32.xlu1 %v2632_v53, %s2394_s9 }
 0x1e2   : > { %v3547_v45 = vpop.permute.xlu2 %1234 }
 0x1e3   : > { %4775 = vst [vmem:[#allocation170_spill] sm:$0xff] %v3547_v45  ;;  %v3549_v17 = vpop.permute.xlu1 %1214  ;;  %v1688_v45 = vsel %vm1672_vm5, %v1655_v62, %v3328_v61  ;;  %v1625_v61 = vsel %vm1606_vm3, %v2684_v55, %v3076_v38 }
 0x1e4   : > { %4776 = vst [vmem:[#allocation171_spill] sm:$0xff] %v3549_v17  ;;  %1329 = vrot.lane.b32.xlu0 %v2589_v21, %s2394_s9  ;;  %v1721_v17 = vsel %vm1705_vm6, %v1688_v45, %v1140_v22  ;;  %v1658_v62 = vsel %vm1639_vm4, %v1625_v61, %v3157_v9 }
 0x1e5   : > { %v1691_v45 = vsel %vm1672_vm5, %v1658_v62, %v3347_v59  ;;  %v1628_v59 = vsel %vm1606_vm3, %v2661_v26, %v3091_v5  ;;  %v4778_v5 = vld [vmem:[#allocation35_spill] sm:$0xff] }
 0x1e6   : > { %v3553_v54 = vpop.permute.xlu0 %1212  ;;  %v1724_v22 = vsel %vm1705_vm6, %v1691_v45, %v1146_v8  ;;  %v1661_v9 = vsel %vm1639_vm4, %v1628_v59, %v3169_v31  ;;  %v4779_v45 = vld [vmem:[#allocation64_spill] sm:$0xff] }
 0x1e7   : > { %v1694_v8 = vsel %vm1672_vm5, %v1661_v9, %v3366_v44 }
 0x1e8   : > { %1339 = vrot.lane.b32.xlu2 %v2664_v11, %s2394_s9  ;;  %v1727_v38 = vsel %vm1705_vm6, %v1694_v8, %v1152_v34 }
 0x1e9   : > { %1337 = vrot.lane.b32.xlu1 %v2667_v32, %s2394_s9 }
 0x1ea   : > { %v1241_v60 = vpop.permute.xlu2 %1240 }
 0x1eb   : > { %v3567_v21 = vpop.permute.xlu1 %1220  ;;  %v3570_v28 = vsel %vm1738_vm7, %v1721_v17, %v1241_v60 }
 0x1ec   : > { %1335 = vrot.lane.b32.xlu0 %v2684_v55, %s2394_s9 }
 0x1ee   : > { %v3574_v40 = vpop.permute.xlu0 %1218 }
 0x1f0   : > { %1355 = vrot.lane.b32.xlu2 %v2776_v2, %s2394_s9 }
 0x1f1   : > { %1343 = vrot.lane.b32.xlu1 %v2704_v10, %s2394_s9 }
 0x1f2   : > { %v1247_v43 = vpop.permute.xlu2 %1246 }
 0x1f3   : > { %v3588_v60 = vpop.permute.xlu1 %1226  ;;  %v3591_v17 = vsel %vm1738_vm7, %v1724_v22, %v1247_v43  ;;  %v4780_v22 = vld [vmem:[#allocation113_spill] sm:$0xff] }
 0x1f4   : > { %1341 = vrot.lane.b32.xlu0 %v2661_v26, %s2394_s9 }
 0x1f6   : > { %v3595_v55 = vpop.permute.xlu0 %1224 }
 0x1f8   : > { %1542 = vrot.lane.b32.xlu2 %v2983_v57, %s2395_s10  ;;  %v4777_v57 = vld [vmem:[#allocation97_spill] sm:$0xff] }
 0x1f9   : > { %1457 = vrot.lane.b32.xlu1 %v2800_v35, %s2396_s11  ;;  %v1631_v44 = vsel %vm1606_vm3, %v4778_v5, %v4777_v57  ;;  %v1621_v35 = vsel %vm1606_vm3, %v2592_v25, %v4779_v45  ;;  %v4783_v57 = vld [vmem:[#allocation100_spill] sm:$0xff] }
 0x1fa   : > { %v1253_v61 = vpop.permute.xlu2 %1252  ;;  %v1664_v34 = vsel %vm1639_vm4, %v1631_v44, %v3181_v50  ;;  %v1654_v43 = vsel %vm1639_vm4, %v1621_v35, %v4780_v22  ;;  %v4781_v50 = vld [vmem:[#allocation82_spill] sm:$0xff]  ;;  %v4784_v44 = vld [vmem:[#allocation31_spill] sm:$0xff] }
 0x1fb   : > { %v3609_v62 = vpop.permute.xlu1 %1232  ;;  %v3612_v26 = vsel %vm1738_vm7, %v1727_v38, %v1253_v61  ;;  %v1687_v59 = vsel %vm1672_vm5, %v1654_v43, %v3332_v39  ;;  %v4782_v61 = vld [vmem:[#allocation114_spill] sm:$0xff]  ;;  %v1634_v45 = vsel %vm1606_vm3, %v4784_v44, %v4783_v57  ;;  %v4786_v43 = vld [vmem:[#allocation115_spill] sm:$0xff] }
 0x1fc   : > { %1441 = vrot.lane.b32.xlu0 %v4723_v27, %s2396_s11  ;;  %v1697_v27 = vsel %vm1672_vm5, %v1664_v34, %v3378_v49  ;;  %v1720_v8 = vsel %vm1705_vm6, %v1687_v59, %v3424_v18  ;;  %v4785_v34 = vld [vmem:[#allocation70_spill] sm:$0xff] }
 0x1fd   : > { %v1730_v25 = vsel %vm1705_vm6, %v1697_v27, %v3517_v24  ;;  %v1624_v22 = vsel %vm1606_vm3, %v2626_v51, %v4785_v34  ;;  %v4788_v59 = vld [vmem:[#allocation146_spill] sm:$0xff]  ;;  %v4795_v34 = vld [vmem:[#allocation75_spill] sm:$0xff] }
 0x1fe   : > { %v3616_v31 = vpop.permute.xlu0 %1230 }
 0x200   : > { %1425 = vrot.lane.b32.xlu2 %v4703_v14, %s2396_s11  ;;  %v1620_v14 = vsel %vm1606_vm3, %v2596_v30, %v4781_v50  ;;  %v4789_v50 = vld [vmem:[#allocation88_spill] sm:$0xff] }
 0x201   : > { %1409 = vrot.lane.b32.xlu1 %v2481_v23, %s2396_s11  ;;  %v1653_v23 = vsel %vm1639_vm4, %v1620_v14, %v4782_v61 }
 0x202   : > { %v1259_v9 = vpop.permute.xlu2 %1258  ;;  %v1686_v24 = vsel %vm1672_vm5, %v1653_v23, %v3278_v7  ;;  %v4787_v7 = vld [vmem:[#allocation116_spill] sm:$0xff] }
 0x203   : > { %v1239_v38 = vpop.permute.xlu1 %1238  ;;  %v3644_v49 = vsel %vm1738_vm7, %v1730_v25, %v1259_v9  ;;  %v1719_v30 = vsel %vm1705_vm6, %v1686_v24, %v3462_v36  ;;  %v1657_v36 = vsel %vm1639_vm4, %v1624_v22, %v4787_v7  ;;  %v4792_v23 = vld [vmem:[#allocation136_spill] sm:$0xff]  ;;  %v1627_v22 = vsel %vm1606_vm3, %v2664_v11, %v4795_v34  ;;  %v4797_v7 = vld [vmem:[#allocation121_spill] sm:$0xff]  ;;  %v4807_v34 = vld [vmem:[#allocation27_spill] sm:$0xff] }
 0x204   : > { %v3649_v39 = vsel %vm1738_vm7, %v1720_v8, %v1239_v38  ;;  %1558 = vrot.lane.b32.xlu0 %v3067_v33, %s2395_s10  ;;  %v1667_v33 = vsel %vm1639_vm4, %v1634_v45, %v4786_v43  ;;  %v1690_v25 = vsel %vm1672_vm5, %v1657_v36, %v4788_v59  ;;  %v4790_v38 = vld [vmem:[#allocation118_spill] sm:$0xff]  ;;  %v4796_v43 = vld [vmem:[#allocation120_spill] sm:$0xff] }
 0x205   : > { %v1700_v27 = vsel %vm1672_vm5, %v1667_v33, %v3390_v41  ;;  %v1723_v14 = vsel %vm1705_vm6, %v1690_v25, %v3436_v58 }
 0x206   : > { %v1237_v18 = vpop.permute.xlu0 %1236  ;;  %v1733_v51 = vsel %vm1705_vm6, %v1700_v27, %v3529_v46  ;;  %v4791_v46 = vld [vmem:[#allocation38_spill] sm:$0xff]  ;;  %v4798_v27 = vld [vmem:[#allocation40_spill] sm:$0xff] }
 0x207   : > { %v3661_v35 = vsel %vm1738_vm7, %v1719_v30, %v1237_v18  ;;  %v4793_v30 = vld [vmem:[#allocation103_spill] sm:$0xff] }
 0x208   : > { %1526 = vrot.lane.b32.xlu2 %v4752_v1, %s2395_s10  ;;  %v1623_v1 = vsel %vm1606_vm3, %v2632_v53, %v4789_v50  ;;  %v4794_v18 = vld [vmem:[#allocation43_spill] sm:$0xff] }
 0x209   : > { %1510 = vrot.lane.b32.xlu1 %v2871_v37, %s2395_s10  ;;  %v1656_v37 = vsel %vm1639_vm4, %v1623_v1, %v4790_v38  ;;  %v1637_v57 = vsel %vm1606_vm3, %v4794_v18, %v4793_v30  ;;  %v4800_v1 = vld [vmem:[#allocation122_spill] sm:$0xff] }
 0x20a   : > { %v1265_v9 = vpop.permute.xlu2 %1264  ;;  %v1689_v24 = vsel %vm1672_vm5, %v1656_v37, %v4792_v23  ;;  %v1670_v33 = vsel %vm1639_vm4, %v1637_v57, %v4796_v43  ;;  %v4804_v37 = vld [vmem:[#allocation5_spill] sm:$0xff]  ;;  %v4808_v43 = vld [vmem:[#allocation123_spill] sm:$0xff] }
 0x20b   : > { %v1245_v8 = vpop.permute.xlu1 %1244  ;;  %v3686_v41 = vsel %vm1738_vm7, %v1733_v51, %v1265_v9  ;;  %v1722_v53 = vsel %vm1705_vm6, %v1689_v24, %v3476_v56  ;;  %v1660_v56 = vsel %vm1639_vm4, %v1627_v22, %v4797_v7  ;;  %v1703_v36 = vsel %vm1672_vm5, %v1670_v33, %v3402_v20  ;;  %v4799_v51 = vld [vmem:[#allocation91_spill] sm:$0xff]  ;;  %v4806_v57 = vld [vmem:[#allocation81_spill] sm:$0xff]  ;;  %v4809_v7 = vld [vmem:[#allocation20_spill] sm:$0xff] }
 0x20c   : > { %v3691_v61 = vsel %vm1738_vm7, %v1723_v14, %v1245_v8  ;;  %1357 = vrot.lane.b32.xlu0 %v4791_v46, %s2394_s9  ;;  %v1693_v59 = vsel %vm1672_vm5, %v1660_v56, %v3370_v4  ;;  %v1736_v11 = vsel %vm1705_vm6, %v1703_v36, %v3541_v3  ;;  %v4801_v3 = vld [vmem:[#allocation34_spill] sm:$0xff]  ;;  %v4802_v8 = vld [vmem:[#allocation139_spill] sm:$0xff]  ;;  %v1630_v22 = vsel %vm1606_vm3, %v4807_v34, %v4806_v57  ;;  %v4810_v56 = vld [vmem:[#allocation124_spill] sm:$0xff] }
 0x20d   : > { %v1726_v9 = vsel %vm1705_vm6, %v1693_v59, %v3448_v19  ;;  %v4812_v59 = vld [vmem:[#allocation46_spill] sm:$0xff] }
 0x20e   : > { %v1243_v58 = vpop.permute.xlu0 %1242  ;;  %v4820_v57 = vld [vmem:[#allocation126_spill] sm:$0xff] }
 0x20f   : > { %v3703_v45 = vsel %vm1738_vm7, %v1722_v53, %v1243_v58  ;;  %v4805_v53 = vld [vmem:[#allocation106_spill] sm:$0xff] }
 0x210   : > { %1544 = vrot.lane.b32.xlu2 %v4762_v6, %s2395_s10  ;;  %v1626_v6 = vsel %vm1606_vm3, %v2667_v32, %v4799_v51  ;;  %v4803_v32 = vld [vmem:[#allocation67_spill] sm:$0xff] }
 0x211   : > { %1459 = vrot.lane.b32.xlu1 %v4798_v27, %s2396_s11  ;;  %v1659_v14 = vsel %vm1639_vm4, %v1626_v6, %v4800_v1  ;;  %v1608_v19 = vsel %vm1606_vm3, %v4804_v37, %v4803_v32  ;;  %v4811_v27 = vld [vmem:[#allocation7_spill] sm:$0xff]  ;;  %v4813_v6 = vld [vmem:[#allocation94_spill] sm:$0xff] }
 0x212   : > { %v1271_v25 = vpop.permute.xlu2 %1270  ;;  %v1692_v38 = vsel %vm1672_vm5, %v1659_v14, %v4802_v8  ;;  %v1641_v58 = vsel %vm1639_vm4, %v1608_v19, %v4805_v53  ;;  %v4814_v14 = vld [vmem:[#allocation125_spill] sm:$0xff]  ;;  %v4817_v19 = vld [vmem:[#allocation108_spill] sm:$0xff]  ;;  %v4818_v53 = vld [vmem:[#allocation87_spill] sm:$0xff] }
 0x213   : > { %v1251_v50 = vpop.permute.xlu1 %1250  ;;  %v3728_v20 = vsel %vm1738_vm7, %v1736_v11, %v1271_v25  ;;  %v1725_v23 = vsel %vm1705_vm6, %v1692_v38, %v3489_v42  ;;  %v1674_v33 = vsel %vm1672_vm5, %v1641_v58, %v4808_v43  ;;  %v1663_v42 = vsel %vm1639_vm4, %v1630_v22, %v4810_v56  ;;  %v4819_v58 = vld [vmem:[#allocation32_spill] sm:$0xff]  ;;  %v4821_v43 = vld [vmem:[#allocation63_spill] sm:$0xff]  ;;  %v4824_v56 = vld [vmem:[#allocation49_spill] sm:$0xff] }
 0x214   : > { %v3733_v4 = vsel %vm1738_vm7, %v1726_v9, %v1251_v50  ;;  %1443 = vrot.lane.b32.xlu0 %v4801_v3, %s2396_s11  ;;  %v1707_v36 = vsel %vm1705_vm6, %v1674_v33, %v3414_v29  ;;  %v1696_v11 = vsel %vm1672_vm5, %v1663_v42, %v4812_v59  ;;  %v1629_v9 = vsel %vm1606_vm3, %v2704_v10, %v4813_v6  ;;  %v4816_v10 = vld [vmem:[#allocation47_spill] sm:$0xff]  ;;  %v4823_v33 = vld [vmem:[#allocation156_spill] sm:$0xff]  ;;  %v4828_v6 = vld [vmem:[#allocation162_spill] sm:$0xff] }
 0x215   : > { %v1740_v25 = vsel %vm1738_vm7, %v1707_v36, %v3553_v54  ;;  %v1729_v50 = vsel %vm1705_vm6, %v1696_v11, %v3460_v52  ;;  %v1662_v3 = vsel %vm1639_vm4, %v1629_v9, %v4814_v14  ;;  %v4815_v54 = vld [vmem:[#allocation141_spill] sm:$0xff]  ;;  %v1611_v52 = vsel %vm1606_vm3, %v2465_v13, %v4816_v10  ;;  %v4822_v13 = vld [vmem:[#allocation127_spill] sm:$0xff]  ;;  %v4825_v42 = vld [vmem:[#allocation152_spill] sm:$0xff] }
 0x216   : > { %v1249_v24 = vpop.permute.xlu0 %1248  ;;  %v1695_v38 = vsel %vm1672_vm5, %v1662_v3, %v4815_v54  ;;  %v4826_v11 = vld [vmem:[#allocation96_spill] sm:$0xff]  ;;  %v4831_v10 = vld [vmem:[#allocation71_spill] sm:$0xff] }
 0x217   : > { %v3747_v30 = vsel %vm1738_vm7, %v1725_v23, %v1249_v24  ;;  %v1728_v32 = vsel %vm1705_vm6, %v1695_v38, %v3503_v15  ;;  %v1644_v23 = vsel %vm1639_vm4, %v1611_v52, %v4817_v19  ;;  %v4829_v14 = vld [vmem:[#allocation128_spill] sm:$0xff]  ;;  %v1614_v52 = vsel %vm1606_vm3, %v2526_v47, %v4831_v10  ;;  %v4832_v19 = vld [vmem:[#allocation110_spill] sm:$0xff]  ;;  %v4845_v10 = vld [vmem:[#allocation61_spill] sm:$0xff] }
 0x218   : > { %1427 = vrot.lane.b32.xlu2 %v4809_v7, %s2396_s11  ;;  %v1677_v22 = vsel %vm1672_vm5, %v1644_v23, %v4820_v57  ;;  %v1647_v23 = vsel %vm1639_vm4, %v1614_v52, %v4832_v19  ;;  %v4834_v57 = vld [vmem:[#allocation129_spill] sm:$0xff]  ;;  %v4836_v47 = vld [vmem:[#allocation130_spill] sm:$0xff] }
 0x219   : > { %1411 = vrot.lane.b32.xlu1 %v4811_v27, %s2396_s11  ;;  %v1710_v7 = vsel %vm1705_vm6, %v1677_v22, %v4823_v33  ;;  %v1680_v22 = vsel %vm1672_vm5, %v1647_v23, %v4834_v57  ;;  %v4838_v33 = vld [vmem:[#allocation45_spill] sm:$0xff]  ;;  %v4846_v52 = vld [vmem:[#allocation6_spill] sm:$0xff] }
 0x21a   : > { %v1310_v51 = vpop.permute.xlu2 %1309  ;;  %v1743_v27 = vsel %vm1738_vm7, %v1710_v7, %v3574_v40  ;;  %v4830_v40 = vld [vmem:[#allocation144_spill] sm:$0xff]  ;;  %v4839_v7 = vld [vmem:[#allocation154_spill] sm:$0xff]  ;;  %v4849_v57 = vld [vmem:[#allocation21_spill] sm:$0xff] }
 0x21b   : > { %v1257_v1 = vpop.permute.xlu1 %1256  ;;  %v3772_v29 = vsel %vm1771_vm8, %v1740_v25, %v1310_v51  ;;  %v4827_v25 = vld [vmem:[#allocation33_spill] sm:$0xff] }
 0x21c   : > { %v3777_v8 = vsel %vm1738_vm7, %v1729_v50, %v1257_v1  ;;  %1560 = vrot.lane.b32.xlu0 %v3060_v63, %s2395_s10  ;;  %v1633_v63 = vsel %vm1606_vm3, %v4819_v58, %v4818_v53  ;;  %v1632_v51 = vsel %vm1606_vm3, %v4827_v25, %v4826_v11 }
 0x21d   : > { %v1666_v15 = vsel %vm1639_vm4, %v1633_v63, %v4822_v13  ;;  %v1665_v3 = vsel %vm1639_vm4, %v1632_v51, %v4829_v14  ;;  %v4833_v63 = vld [vmem:[#allocation90_spill] sm:$0xff]  ;;  %v4843_v14 = vld [vmem:[#allocation145_spill] sm:$0xff] }
 0x21e   : > { %v1255_v37 = vpop.permute.xlu0 %1254  ;;  %v1699_v36 = vsel %vm1672_vm5, %v1666_v15, %v4825_v42  ;;  %v1698_v38 = vsel %vm1672_vm5, %v1665_v3, %v4830_v40  ;;  %v4837_v13 = vld [vmem:[#allocation158_spill] sm:$0xff] }
 0x21f   : > { %v3791_v24 = vsel %vm1738_vm7, %v1728_v32, %v1255_v37  ;;  %v1732_v9 = vsel %vm1705_vm6, %v1699_v36, %v4828_v6  ;;  %v1731_v32 = vsel %vm1705_vm6, %v1698_v38, %v3513_v12  ;;  %v1713_v15 = vsel %vm1705_vm6, %v1680_v22, %v4837_v13  ;;  %v4840_v36 = vld [vmem:[#allocation99_spill] sm:$0xff]  ;;  %v4853_v13 = vld [vmem:[#allocation14_spill] sm:$0xff] }
 0x220   : > { %1528 = vrot.lane.b32.xlu2 %v4821_v43, %s2395_s10  ;;  %v4835_v43 = vld [vmem:[#allocation80_spill] sm:$0xff]  ;;  %v4841_v6 = vld [vmem:[#allocation131_spill] sm:$0xff] }
 0x221   : > { %1512 = vrot.lane.b32.xlu1 %v4824_v56, %s2395_s10  ;;  %v4850_v22 = vld [vmem:[#allocation19_spill] sm:$0xff] }
 0x222   : > { %v1316_v59 = vpop.permute.xlu2 %1315 }
 0x223   : > { %v1263_v50 = vpop.permute.xlu1 %1262  ;;  %v3816_v1 = vsel %vm1771_vm8, %v1743_v27, %v1316_v59  ;;  %v1635_v27 = vsel %vm1606_vm3, %v2776_v2, %v4840_v36  ;;  %v4844_v2 = vld [vmem:[#allocation76_spill] sm:$0xff] }
 0x224   : > { %v3821_v54 = vsel %vm1738_vm7, %v1732_v9, %v1263_v50  ;;  %1359 = vrot.lane.b32.xlu0 %v4794_v18, %s2394_s9  ;;  %v1636_v18 = vsel %vm1606_vm3, %v4791_v46, %v4833_v63  ;;  %v1746_v46 = vsel %vm1738_vm7, %v1713_v15, %v3595_v55  ;;  %v1668_v9 = vsel %vm1639_vm4, %v1635_v27, %v4841_v6  ;;  %v4842_v55 = vld [vmem:[#allocation30_spill] sm:$0xff]  ;;  %v4848_v63 = vld [vmem:[#allocation93_spill] sm:$0xff]  ;;  %v4854_v15 = vld [vmem:[#allocation55_spill] sm:$0xff] }
 0x225   : > { %v1669_v12 = vsel %vm1639_vm4, %v1636_v18, %v4836_v47  ;;  %v1701_v3 = vsel %vm1672_vm5, %v1668_v9, %v4843_v14  ;;  %v4852_v47 = vld [vmem:[#allocation160_spill] sm:$0xff]  ;;  %v4857_v27 = vld [vmem:[#allocation165_spill] sm:$0xff] }
 0x226   : > { %v1261_v37 = vpop.permute.xlu0 %1260  ;;  %v1702_v56 = vsel %vm1672_vm5, %v1669_v12, %v4839_v7  ;;  %v1734_v40 = vsel %vm1705_vm6, %v1701_v3, %v3525_v48  ;;  %v4851_v48 = vld [vmem:[#allocation132_spill] sm:$0xff]  ;;  %v4858_v9 = vld [vmem:[#allocation133_spill] sm:$0xff] }
 0x227   : > { %v3835_v53 = vsel %vm1738_vm7, %v1731_v32, %v1261_v37  ;;  %v1735_v59 = vsel %vm1705_vm6, %v1702_v56, %v3487_v16  ;;  %v1617_v16 = vsel %vm1606_vm3, %v2560_v0, %v4844_v2  ;;  %v1607_v32 = vsel %vm1606_vm3, %v4846_v52, %v4845_v10  ;;  %v4847_v37 = vld [vmem:[#allocation112_spill] sm:$0xff]  ;;  %v4860_v3 = vld [vmem:[#allocation149_spill] sm:$0xff] }
 0x228   : > { %1546 = vrot.lane.b32.xlu2 %v4835_v43, %s2395_s10  ;;  %v1650_v19 = vsel %vm1639_vm4, %v1617_v16, %v4847_v37  ;;  %v1640_v18 = vsel %vm1639_vm4, %v1607_v32, %v4848_v63  ;;  %v4861_v16 = vld [vmem:[#allocation169_spill] sm:$0xff]  ;;  %v4863_v52 = vld [vmem:[#allocation4_spill] sm:$0xff] }
 0x229   : > { %1461 = vrot.lane.b32.xlu1 %v4838_v33, %s2396_s11  ;;  %v1683_v0 = vsel %vm1672_vm5, %v1650_v19, %v4849_v57  ;;  %v1673_v43 = vsel %vm1672_vm5, %v1640_v18, %v4851_v48  ;;  %v4862_v10 = vld [vmem:[#allocation65_spill] sm:$0xff]  ;;  %v4864_v19 = vld [vmem:[#allocation95_spill] sm:$0xff]  ;;  %v4865_v18 = vld [vmem:[#allocation48_spill] sm:$0xff] }
 0x22a   : > { %v1322_v42 = vpop.permute.xlu2 %1321  ;;  %v1716_v12 = vsel %vm1705_vm6, %v1683_v0, %v4852_v47  ;;  %v1706_v33 = vsel %vm1705_vm6, %v1673_v43, %v4854_v15  ;;  %v1610_v32 = vsel %vm1606_vm3, %v4863_v52, %v4862_v10  ;;  %v4866_v57 = vld [vmem:[#allocation134_spill] sm:$0xff]  ;;  %v4868_v48 = vld [vmem:[#allocation3_spill] sm:$0xff]  ;;  %v4869_v47 = vld [vmem:[#allocation157_spill] sm:$0xff] }
 0x22b   : > { %v1269_v11 = vpop.permute.xlu1 %1268  ;;  %v3860_v51 = vsel %vm1771_vm8, %v1746_v46, %v1322_v42  ;;  %v1749_v7 = vsel %vm1738_vm7, %v1716_v12, %v3616_v31  ;;  %v4855_v46 = vld [vmem:[#allocation102_spill] sm:$0xff]  ;;  %v4856_v42 = vld [vmem:[#allocation41_spill] sm:$0xff]  ;;  %v1643_v63 = vsel %vm1639_vm4, %v1610_v32, %v4864_v19  ;;  %v1872_v10 = vld [vmem:[%s4447_s3 + $0x10] sm:$0xff] }
 0x22c   : > { %v3865_v50 = vsel %vm1738_vm7, %v1735_v59, %v1269_v11  ;;  %1445 = vrot.lane.b32.xlu0 %v4842_v55, %s2396_s11  ;;  %v1638_v36 = vsel %vm1606_vm3, %v4856_v42, %v4855_v46  ;;  %v1739_v59 = vsel %vm1738_vm7, %v1706_v33, %v4857_v27  ;;  %v4859_v31 = vld [vmem:[#allocation89_spill] sm:$0xff]  ;;  %v1676_v0 = vsel %vm1672_vm5, %v1643_v63, %v4866_v57  ;;  %v4877_v52 = vld [vmem:[#allocation98_spill] sm:$0xff]  ;;  %v4878_v19 = vld [vmem:[#allocation44_spill] sm:$0xff] }
 0x22d   : > { %v1671_v55 = vsel %vm1639_vm4, %v1638_v36, %v4858_v9  ;;  %v1709_v12 = vsel %vm1705_vm6, %v1676_v0, %v4869_v47  ;;  %v4870_v15 = vld [vmem:[#allocation105_spill] sm:$0xff]  ;;  %v4873_v9 = vld [vmem:[#allocation150_spill] sm:$0xff]  ;;  %v1871_v0 = vld [vmem:[%s4447_s3 + $0x8] sm:$0xff] }
 0x22e   : > { %v1267_v38 = vpop.permute.xlu0 %1266  ;;  %v1704_v2 = vsel %vm1672_vm5, %v1671_v55, %v4860_v3  ;;  %v4879_v63 = vld [vmem:[#allocation137_spill] sm:$0xff]  ;;  %v4883_v47 = vld [vmem:[#allocation159_spill] sm:$0xff] }
 0x22f   : > { %v3882_v23 = vsel %vm1738_vm7, %v1734_v40, %v1267_v38  ;;  %v1737_v40 = vsel %vm1705_vm6, %v1704_v2, %v4861_v16  ;;  %v1873_v2 = vld [vmem:[%s4447_s3 + $0x18] sm:$0xff]  ;;  %v4876_v16 = vld [vmem:[#allocation10_spill] sm:$0xff] }
 0x230   : > { %1429 = vrot.lane.b32.xlu2 %v4850_v22, %s2396_s11  ;;  %v4867_v22 = vld [vmem:[#allocation59_spill] sm:$0xff]  ;;  %v4880_v57 = vld [vmem:[#allocation29_spill] sm:$0xff] }
 0x231   : > { %1413 = vrot.lane.b32.xlu1 %v4853_v13, %s2396_s11  ;;  %v1609_v43 = vsel %vm1606_vm3, %v4868_v48, %v4867_v22  ;;  %v4881_v22 = vld [vmem:[#allocation50_spill] sm:$0xff] }
 0x232   : > { %v1328_v56 = vpop.permute.xlu2 %1327  ;;  %v1642_v33 = vsel %vm1639_vm4, %v1609_v43, %v4870_v15  ;;  %v4882_v48 = vld [vmem:[#allocation2_spill] sm:$0xff]  ;;  %v4884_v15 = vld [vmem:[#allocation107_spill] sm:$0xff] }
 0x233   : > { %v1308_v11 = vpop.permute.xlu1 %1307  ;;  %v3906_v6 = vsel %vm1771_vm8, %v1749_v7, %v1328_v56  ;;  %v4871_v7 = vld [vmem:[#allocation166_spill] sm:$0xff]  ;;  %v1612_v43 = vsel %vm1606_vm3, %v4882_v48, %v4881_v22 }
 0x234   : > { %v3911_v14 = vsel %vm1771_vm8, %v1739_v59, %v1308_v11  ;;  %1562 = vrot.lane.b32.xlu0 %v4859_v31, %s2395_s10  ;;  %v1742_v56 = vsel %vm1738_vm7, %v1709_v12, %v4871_v7  ;;  %v1874_v11 = vld [vmem:[%s4447_s3 + $0x20] sm:$0xf]  ;;  %v4885_v7 = vld [vmem:[#allocation167_spill] sm:$0xff] }
 0x235   : > { %2317 = vmatpush.msk.msra.mxu1 %vm1976_vm9, %v1874_v11  ;;  %2318 = vmatpush.msk.msra.mxu2 %vm1976_vm9, %v1874_v11  ;;  %v4896_v48 = vld [vmem:[#allocation142_spill] sm:$0xff] }
 0x236   : > { %v1273_v38 = vpop.permute.xlu0 %1272  ;;  %2319 = vmatpush.msk.msra.mxu3 %vm1976_vm9, %v1874_v11  ;;  %2276 = vmatpush.msk.msra.mxu0 %vm1976_vm9, %v1874_v11 }
 0x237   : > { %v3923_v37 = vsel %vm1738_vm7, %v1737_v40, %v1273_v38  ;;  %2320 = vmatpush.msra.mxu1 %v1873_v2  ;;  %2321 = vmatpush.msra.mxu2 %v1873_v2 }
 0x238   : > { %1514 = vrot.lane.b32.xlu2 %v4865_v18, %s2395_s10  ;;  %2322 = vmatpush.msra.mxu3 %v1873_v2 }
 0x239   : > { %1361 = vrot.lane.b32.xlu1 %v4856_v42, %s2394_s9  ;;  %v4872_v42 = vld [vmem:[#allocation135_spill] sm:$0xff]  ;;  %2323 = vmatpush.msra.mxu1 %v1872_v10 }
 0x23a   : > { %v1334_v13 = vpop.permute.xlu2 %1333  ;;  %v1675_v27 = vsel %vm1672_vm5, %v1642_v33, %v4872_v42  ;;  %2324 = vmatpush.msra.mxu2 %v1872_v10  ;;  %2325 = vmatpush.msra.mxu3 %v1872_v10  ;;  %v1645_v33 = vsel %vm1639_vm4, %v1612_v43, %v4884_v15  ;;  %v4886_v42 = vld [vmem:[#allocation138_spill] sm:$0xff] }
 0x23b   : > { %v1314_v46 = vpop.permute.xlu1 %1313  ;;  %v3944_v36 = vsel %vm1771_vm8, %v3661_v35, %v1334_v13  ;;  %v1708_v55 = vsel %vm1705_vm6, %v1675_v27, %v4873_v9  ;;  %v4874_v35 = vld [vmem:[#allocation171_spill] sm:$0xff]  ;;  %2326 = vmatpush.msra.mxu1 %v1871_v0  ;;  %1992 = vmatpush.msra.mxu0 %v1873_v2  ;;  %v1678_v27 = vsel %vm1672_vm5, %v1645_v33, %v4886_v42  ;;  %v4887_v9 = vld [vmem:[#allocation62_spill] sm:$0xff]  ;;  %v4899_v33 = vld [vmem:[#allocation161_spill] sm:$0xff] }
 0x23c   : > { %v3949_v59 = vsel %vm1771_vm8, %v1742_v56, %v1314_v46  ;;  %1345 = vrot.lane.b32.xlu0 %v4807_v34, %s2394_s9  ;;  %v1741_v31 = vsel %vm1738_vm7, %v1708_v55, %v4874_v35  ;;  %v4875_v34 = vld [vmem:[#allocation73_spill] sm:$0xff]  ;;  %v1870_v55 = vld [vmem:[%s4447_s3] sm:$0xff]  ;;  %2327 = vmatpush.msra.mxu2 %v1871_v0  ;;  %v4888_v35 = vld [vmem:[#allocation151_spill] sm:$0xff] }
 0x23d   : > { %v1613_v40 = vsel %vm1606_vm3, %v4876_v16, %v4875_v34  ;;  %2329 = vmatpush.msra.mxu1 %v1870_v55  ;;  %2328 = vmatpush.msra.mxu3 %v1871_v0  ;;  %v4889_v16 = vld [vmem:[#allocation12_spill] sm:$0xff] }
 0x23e   : > { %v1312_v3 = vpop.permute.xlu0 %1311  ;;  %v1646_v32 = vsel %vm1639_vm4, %v1613_v40, %v4877_v52  ;;  %2330 = vmatpush.msra.mxu2 %v1870_v55  ;;  %1993 = vmatpush.msra.mxu0 %v1872_v10  ;;  %v4890_v40 = vld [vmem:[#allocation92_spill] sm:$0xff] }
 0x23f   : > { %v3967_v38 = vsel %vm1771_vm8, %v1741_v31, %v1312_v3  ;;  %v1679_v18 = vsel %vm1672_vm5, %v1646_v32, %v4879_v63  ;;  %v1711_v31 = vsel %vm1705_vm6, %v1678_v27, %v4888_v35  ;;  %2331 = vmatpush.msra.mxu3 %v1870_v55  ;;  %v4893_v63 = vld [vmem:[#allocation18_spill] sm:$0xff]  ;;  %v4902_v35 = vld [vmem:[#allocation143_spill] sm:$0xff] }
 0x240   : > { %1463 = vrot.lane.b32.xlu2 %v4878_v19, %s2396_s11  ;;  %v1712_v12 = vsel %vm1705_vm6, %v1679_v18, %v4883_v47  ;;  %v1744_v3 = vsel %vm1738_vm7, %v1711_v31, %v3567_v21  ;;  %1994 = vmatpush.msra.mxu0 %v1871_v0  ;;  %v4891_v21 = vld [vmem:[#allocation79_spill] sm:$0xff]  ;;  %v4892_v19 = vld [vmem:[#allocation84_spill] sm:$0xff]  ;;  %v4897_v47 = vld [vmem:[#allocation58_spill] sm:$0xff] }
 0x241   : > { %1447 = vrot.lane.b32.xlu1 %v4880_v57, %s2396_s11  ;;  %v1745_v56 = vsel %vm1738_vm7, %v1712_v12, %v4885_v7  ;;  %v1619_v18 = vsel %vm1606_vm3, %v4893_v63, %v4892_v19  ;;  %v4894_v57 = vld [vmem:[#allocation104_spill] sm:$0xff]  ;;  %v4895_v0 = vld [vmem:[#allocation119_spill] sm:$0xff]  ;;  %v4898_v12 = vld [vmem:[#allocation13_spill] sm:$0xff] }
 0x242   : > { %v3988_v13 = vpop.permute.xlu2 %1339  ;;  %1995 = vmatpush.msra.mxu0 %v1870_v55  ;;  %v1652_v22 = vsel %vm1639_vm4, %v1619_v18, %v4894_v57  ;;  %v1618_v15 = vsel %vm1606_vm3, %v4898_v12, %v4897_v47  ;;  %v4901_v27 = vld [vmem:[#allocation170_spill] sm:$0xff]  ;;  %v4905_v63 = vld [vmem:[#allocation39_spill] sm:$0xff]  ;;  %v4906_v18 = vld [vmem:[#allocation60_spill] sm:$0xff] }
 0x243   : > { %v1320_v46 = vpop.permute.xlu1 %1319  ;;  %v1685_v43 = vsel %vm1672_vm5, %v1652_v22, %v4896_v48  ;;  %v4908_v48 = vld [vmem:[#allocation9_spill] sm:$0xff] }
 0x244   : > { %v3997_v11 = vsel %vm1771_vm8, %v1745_v56, %v1320_v46  ;;  %1530 = vrot.lane.b32.xlu0 %v4887_v9, %s2395_s10  ;;  %v1718_v7 = vsel %vm1705_vm6, %v1685_v43, %v4899_v33  ;;  %v4900_v46 = vld [vmem:[#allocation111_spill] sm:$0xff]  ;;  %v4910_v12 = vld [vmem:[#allocation109_spill] sm:$0xff] }
 0x245   : > { %v1651_v42 = vsel %vm1639_vm4, %v1618_v15, %v4900_v46  ;;  %v1751_v9 = vsel %vm1738_vm7, %v1718_v7, %v4901_v27  ;;  %v4911_v33 = vld [vmem:[#allocation25_spill] sm:$0xff] }
 0x246   : > { %v1318_v2 = vpop.permute.xlu0 %1317  ;;  %v1684_v31 = vsel %vm1672_vm5, %v1651_v42, %v4902_v35  ;;  %v4912_v42 = vld [vmem:[#allocation153_spill] sm:$0xff] }
 0x247   : > { %v4009_v34 = vsel %vm1771_vm8, %v1744_v3, %v1318_v2  ;;  %v4903_v3 = vld [vmem:[#allocation24_spill] sm:$0xff]  ;;  %v4904_v2 = vld [vmem:[#allocation155_spill] sm:$0xff] }
 0x248   : > { %1415 = vrot.lane.b32.xlu2 %v4889_v16, %s2396_s11  ;;  %v1717_v16 = vsel %vm1705_vm6, %v1684_v31, %v4904_v2  ;;  %v4914_v31 = vld [vmem:[#allocation77_spill] sm:$0xff] }
 0x249   : > { %1564 = vrot.lane.b32.xlu1 %v4890_v40, %s2395_s10  ;;  %v1750_v40 = vsel %vm1738_vm7, %v1717_v16, %v3609_v62  ;;  %v4909_v62 = vld [vmem:[#allocation53_spill] sm:$0xff] }
 0x24a   : > { %v4015_v52 = vpop.permute.xlu2 %1355 }
 0x24b   : > { %v4017_v32 = vpop.permute.xlu1 %1325 }
 0x24c   : > { %1548 = vrot.lane.b32.xlu0 %v4891_v21, %s2395_s10 }
 0x24e   : > { %v1324_v10 = vpop.permute.xlu0 %1323 }
 0x250   : > { %1363 = vrot.lane.b32.xlu2 %v4895_v0, %s2394_s9  ;;  %v4907_v0 = vld [vmem:[#allocation54_spill] sm:$0xff] }
 0x251   : > { %1347 = vrot.lane.b32.xlu1 %v4778_v5, %s2394_s9  ;;  %v1615_v43 = vsel %vm1606_vm3, %v4908_v48, %v4907_v0 }
 0x252   : > { %v1543_v56 = vpop.permute.xlu2 %1542  ;;  %v1648_v15 = vsel %vm1639_vm4, %v1615_v43, %v4910_v12  ;;  %v4919_v43 = vld [vmem:[#allocation52_spill] sm:$0xff] }
 0x253   : > { %v1332_v55 = vpop.permute.xlu1 %1331  ;;  %v1681_v7 = vsel %vm1672_vm5, %v1648_v15, %v4911_v33  ;;  %v4920_v15 = vld [vmem:[#allocation78_spill] sm:$0xff]  ;;  %v4921_v33 = vld [vmem:[#allocation8_spill] sm:$0xff] }
 0x254   : > { %v4044_v5 = vsel %vm1771_vm8, %v1751_v9, %v1332_v55  ;;  %1431 = vrot.lane.b32.xlu0 %v4903_v3, %s2396_s11  ;;  %v1714_v27 = vsel %vm1705_vm6, %v1681_v7, %v4912_v42  ;;  %v4913_v55 = vld [vmem:[#allocation163_spill] sm:$0xff]  ;;  %v1616_v7 = vsel %vm1606_vm3, %v4921_v33, %v4920_v15  ;;  %v4924_v42 = vld [vmem:[#allocation140_spill] sm:$0xff] }
 0x256   : > { %v1330_v21 = vpop.permute.xlu0 %1329 }
 0x257   : > { %v4053_v19 = vsel %vm1771_vm8, %v1750_v40, %v1330_v21  ;;  %v4915_v40 = vld [vmem:[#allocation148_spill] sm:$0xff] }
 0x258   : > { %1449 = vrot.lane.b32.xlu2 %v4905_v63, %s2396_s11 }
 0x259   : > { %1532 = vrot.lane.b32.xlu1 %v4906_v18, %s2395_s10  ;;  %v4917_v18 = vld [vmem:[#allocation11_spill] sm:$0xff] }
 0x25a   : > { %v1426_v57 = vpop.permute.xlu2 %1425 }
 0x25b   : > { %v1338_v22 = vpop.permute.xlu1 %1337 }
 0x25c   : > { %v4064_v47 = vsel %vm1771_vm8, %v3570_v28, %v1338_v22  ;;  %1516 = vrot.lane.b32.xlu0 %v4909_v62, %s2395_s10  ;;  %v1747_v28 = vsel %vm1738_vm7, %v1714_v27, %v3588_v60 }
 0x25d   : > { %v1780_v35 = vsel %vm1771_vm8, %v1747_v28, %v1324_v10  ;;  %v4916_v10 = vld [vmem:[#allocation23_spill] sm:$0xff] }
 0x25e   : > { %v1336_v46 = vpop.permute.xlu0 %1335  ;;  %v1813_v3 = vsel %vm1804_vm10, %v1780_v35, %v1426_v57  ;;  %v1788_v57 = vsel %vm1771_vm8, %v3703_v45, %v3988_v13  ;;  %v4922_v45 = vld [vmem:[#allocation117_spill] sm:$0xff]  ;;  %v4925_v35 = vld [vmem:[#allocation72_spill] sm:$0xff] }
 0x25f   : > { %v4076_v9 = vsel %vm1771_vm8, %v3649_v39, %v1336_v46  ;;  %v4923_v13 = vld [vmem:[#allocation101_spill] sm:$0xff]  ;;  %v1796_v46 = vsel %vm1771_vm8, %v3644_v49, %v4015_v52  ;;  %v4928_v52 = vld [vmem:[#allocation147_spill] sm:$0xff] }
 0x260   : > { %1566 = vrot.lane.b32.xlu2 %v4913_v55, %s2395_s10 }
 0x261   : > { %1550 = vrot.lane.b32.xlu1 %v4914_v31, %s2395_s10 }
 0x262   : > { %v1527_v2 = vpop.permute.xlu2 %1526 }
 0x263   : > { %v4086_v16 = vpop.permute.xlu1 %1343  ;;  %v1846_v39 = vsel %vm1837_vm11, %v1813_v3, %v1527_v2  ;;  %v4926_v2 = vld [vmem:[#allocation168_spill] sm:$0xff] }
 0x264   : > { %1465 = vrot.lane.b32.xlu0 %v4915_v40, %s2396_s11  ;;  %2285 = vmatmul.msk.f32.vlgmr.msra.gmra.mxu1 %vm1879_vm12, %v1846_v39  ;;  %v4927_v40 = vld [vmem:[#allocation86_spill] sm:$0xff] }
 0x266   : > { %v1342_v60 = vpop.permute.xlu0 %1341 }
 0x268   : > { %1349 = vrot.lane.b32.xlu2 %v4827_v25, %s2394_s9  ;;  %v4918_v25 = vld [vmem:[#allocation69_spill] sm:$0xff] }
 0x269   : > { %1433 = vrot.lane.b32.xlu1 %v4916_v10, %s2396_s11 }
 0x26a   : > { %v1545_v21 = vpop.permute.xlu2 %1544 }
 0x26b   : > { %v1458_v63 = vpop.permute.xlu1 %1457 }
 0x26c   : > { %1417 = vrot.lane.b32.xlu0 %v4917_v18, %s2396_s11  ;;  %v1829_v28 = vsel %vm1804_vm10, %v1796_v46, %v1458_v63  ;;  %v1789_v46 = vsel %vm1771_vm8, %v3691_v61, %v1342_v60 }
 0x26e   : > { %v1442_v22 = vpop.permute.xlu0 %1441 }
 0x26f   : > { %v1821_v0 = vsel %vm1804_vm10, %v1788_v57, %v1442_v22 }
 0x270   : > { %v1854_v48 = vsel %vm1837_vm11, %v1821_v0, %v1543_v56  ;;  %1534 = vrot.lane.b32.xlu2 %v4918_v25, %s2395_s10  ;;  %v1649_v56 = vsel %vm1639_vm4, %v1616_v7, %v4923_v13  ;;  %v401_v0 = vld [vmem:[%s377_s29] sm:$0xff]  ;;  %v4929_v25 = vld [vmem:[#allocation37_spill] sm:$0xff] }
 0x271   : > { %2293 = vmatmul.msk.f32.vlgmr.msra.gmra.mxu2 %vm1879_vm12, %v1854_v48  ;;  %1518 = vrot.lane.b32.xlu1 %v4919_v43, %s2395_s10  ;;  %v1682_v27 = vsel %vm1672_vm5, %v1649_v56, %v4924_v42  ;;  %v402_v48 = vld [vmem:[%s377_s29 + $0x8] sm:$0xff]  ;;  %v4932_v56 = vld [vmem:[#allocation164_spill] sm:$0xff] }
 0x272   : > { %v1428_v62 = vpop.permute.xlu2 %1427  ;;  %v1715_v31 = vsel %vm1705_vm6, %v1682_v27, %v4925_v35  ;;  %v4146_v15 = vmul.f32 0.0, %v402_v48 }
 0x273   : > { %v1410_v12 = vpop.permute.xlu1 %1409  ;;  %v1748_v39 = vsel %vm1738_vm7, %v1715_v31, %v4926_v2  ;;  %v4933_v31 = vld [vmem:[#allocation51_spill] sm:$0xff] }
 0x274   : > { %1365 = vrot.lane.b32.xlu0 %v4922_v45, %s2394_s9  ;;  %v1781_v49 = vsel %vm1771_vm8, %v1748_v39, %v4017_v32  ;;  %v1805_v18 = vsel %vm1804_vm10, %v3911_v14, %v1410_v12  ;;  %v4930_v14 = vld [vmem:[#allocation22_spill] sm:$0xff]  ;;  %v4931_v12 = vld [vmem:[#allocation17_spill] sm:$0xff]  ;;  %v530_v45 = vrot.slane %v4146_v15, 7  ;;  %v1790_v15 = vsel %vm1771_vm8, %v3591_v17, %v4086_v16  ;;  %v4938_v17 = vld [vmem:[#allocation28_spill] sm:$0xff] }
 0x275   : > { %v1814_v10 = vsel %vm1804_vm10, %v1781_v49, %v1428_v62  ;;  %v407_v62 = vmul.f32 0.0, %v401_v0 }
 0x276   : > { %v1559_v55 = vpop.permute.xlu0 %1558 }
 0x277   : > { %v1862_v3 = vsel %vm1837_vm11, %v1829_v28, %v1559_v55  ;;  %v529_v7 = vrot.slane %v407_v62, 7 }
 0x278   : > { %2301 = vmatmul.msk.f32.vlgmr.msra.gmra.mxu3 %vm1879_vm12, %v1862_v3  ;;  %1552 = vrot.lane.b32.xlu2 %v4927_v40, %s2395_s10 }
 0x279   : > { %1467 = vrot.lane.b32.xlu1 %v4928_v52, %s2396_s11  ;;  %v4158_v27 = vsel %vm477_vm0, %v529_v7, %v530_v45  ;;  %v601_v28 = vsel %vm477_vm0, 0.0, %v529_v7 }
 0x27a   : > { %v1529_v63 = vpop.permute.xlu2 %1528  ;;  %v1404_v3 = vrot.slane %v601_v28, 1  ;;  %v1405_v61 = vrot.slane %v4158_v27, 1 }
 0x27b   : > { %v1511_v57 = vpop.permute.xlu1 %1510  ;;  %v1847_v22 = vsel %vm1837_vm11, %v1814_v10, %v1529_v63  ;;  %v4934_v10 = vld [vmem:[#allocation36_spill] sm:$0xff]  ;;  %v1505_v63 = vrot.slane %v601_v28, 2 }
 0x27c   : > { %1451 = vrot.lane.b32.xlu0 %v4929_v25, %s2396_s11  ;;  %v1838_v43 = vsel %vm1837_vm11, %v1805_v18, %v1511_v57  ;;  %2286 = vmatmul.msk.f32.gmra.mxu1 %vm1879_vm12, %v1847_v22  ;;  %v4935_v22 = vld [vmem:[#allocation68_spill] sm:$0xff] }
 0x27d   : > { %2277 = vmatmul.msk.f32.vlgmr.msra.gmra.mxu0 %vm1879_vm12, %v1838_v43  ;;  %v4936_v43 = vld [vmem:[#allocation16_spill] sm:$0xff] }
 0x27e   : > { %v1358_v32 = vpop.permute.xlu0 %1357 }
 0x27f   : > { %v1797_v39 = vsel %vm1771_vm8, %v3835_v53, %v1358_v32 }
 0x280   : > { %1435 = vrot.lane.b32.xlu2 %v4930_v14, %s2396_s11 }
 0x281   : > { %1419 = vrot.lane.b32.xlu1 %v4931_v12, %s2396_s11 }
 0x282   : > { %v1547_v33 = vpop.permute.xlu2 %1546 }
 0x283   : > { %v1460_v13 = vpop.permute.xlu1 %1459 }
 0x284   : > { %1568 = vrot.lane.b32.xlu0 %v4932_v56, %s2395_s10  ;;  %v1830_v40 = vsel %vm1804_vm10, %v1797_v39, %v1460_v13 }
 0x286   : > { %v1444_v42 = vpop.permute.xlu0 %1443 }
 0x287   : > { %v1822_v55 = vsel %vm1804_vm10, %v1789_v46, %v1444_v42 }
 0x288   : > { %v1855_v35 = vsel %vm1837_vm11, %v1822_v55, %v1545_v21  ;;  %1520 = vrot.lane.b32.xlu2 %v4933_v31, %s2395_s10  ;;  %v1406_v21 = vsel %vm652_vm1, %v1404_v3, %v1405_v61  ;;  %v619_v55 = vsel %vm477_vm0, %v530_v45, 0.0  ;;  %v4941_v31 = vld [vmem:[#allocation57_spill] sm:$0xff] }
 0x289   : > { %2294 = vmatmul.msk.f32.gmra.mxu2 %vm1879_vm12, %v1855_v35  ;;  %1367 = vrot.lane.b32.xlu1 %v601_v28, %s2394_s9  ;;  %v4940_v28 = vld [vmem:[#allocation66_spill] sm:$0xff]  ;;  %v1407_v3 = vrot.slane %v619_v55, 1 }
 0x28a   : > { %v1430_v60 = vpop.permute.xlu2 %1429 }
 0x28b   : > { %v1412_v2 = vpop.permute.xlu1 %1411  ;;  %v1815_v45 = vsel %vm1804_vm10, %v3906_v6, %v1430_v60  ;;  %v4945_v6 = vld [vmem:[#allocation15_spill] sm:$0xff] }
 0x28c   : > { %1351 = vrot.lane.b32.xlu0 %v4819_v58, %s2394_s9  ;;  %v1506_v58 = vrot.slane %v4158_v27, 2  ;;  %v1806_v53 = vsel %vm1804_vm10, %v3772_v29, %v1412_v2  ;;  %v4937_v29 = vld [vmem:[#allocation85_spill] sm:$0xff] }
 0x28e   : > { %v1561_v49 = vpop.permute.xlu0 %1560  ;;  %v1507_v25 = vsel %vm829_vm2, %v1505_v63, %v1506_v58 }
 0x28f   : > { %v1863_v52 = vsel %vm1837_vm11, %v1830_v40, %v1561_v49  ;;  %v4942_v40 = vld [vmem:[#allocation83_spill] sm:$0xff]  ;;  %v1408_v49 = vsel %vm652_vm1, %v1405_v61, %v1407_v3  ;;  %v4944_v61 = vld [vmem:[#allocation26_spill] sm:$0xff] }
 0x290   : > { %2302 = vmatmul.msk.f32.gmra.mxu3 %vm1879_vm12, %v1863_v52  ;;  %1469 = vrot.lane.b32.xlu2 %v1406_v21, %s2396_s11 }
 0x291   : > { %1453 = vrot.lane.b32.xlu1 %v4934_v10, %s2396_s11 }
 0x292   : > { %v1515_v18 = vpop.permute.xlu2 %1514 }
 0x293   : > { %v1513_v57 = vpop.permute.xlu1 %1512 }
 0x294   : > { %1536 = vrot.lane.b32.xlu0 %v4935_v22, %s2395_s10  ;;  %v1839_v0 = vsel %vm1837_vm11, %v1806_v53, %v1513_v57  ;;  %v4943_v53 = vld [vmem:[#allocation56_spill] sm:$0xff] }
 0x295   : > { %2278 = vmatmul.msk.f32.gmra.mxu0 %vm1879_vm12, %v1839_v0 }
 0x296   : > { %v1360_v48 = vpop.permute.xlu0 %1359 }
 0x297   : > { %v1798_v16 = vsel %vm1771_vm8, %v3821_v54, %v1360_v48  ;;  %v1508_v54 = vrot.slane %v619_v55, 2 }
 0x298   : > { %1421 = vrot.lane.b32.xlu2 %v4936_v43, %s2396_s11 }
 0x299   : > { %1570 = vrot.lane.b32.xlu1 %v1507_v25, %s2395_s10  ;;  %v1509_v2 = vsel %vm829_vm2, %v1506_v58, %v1508_v54 }
 0x29a   : > { %v1464_v32 = vpop.permute.xlu2 %1463 }
 0x29b   : > { %v1462_v62 = vpop.permute.xlu1 %1461 }
 0x29c   : > { %1554 = vrot.lane.b32.xlu0 %v4937_v29, %s2395_s10  ;;  %v1831_v42 = vsel %vm1804_vm10, %v1798_v16, %v1462_v62 }
 0x29e   : > { %v1446_v14 = vpop.permute.xlu0 %1445 }
 0x29f   : > { %v1823_v12 = vsel %vm1804_vm10, %v1790_v15, %v1446_v14 }
 0x2a0   : > { %v1856_v7 = vsel %vm1837_vm11, %v1823_v12, %v1547_v33  ;;  %1369 = vrot.lane.b32.xlu2 %v4158_v27, %s2394_s9 }
 0x2a1   : > { %2295 = vmatmul.msk.f32.gmra.mxu2 %vm1879_vm12, %v1856_v7  ;;  %1353 = vrot.lane.b32.xlu1 %v4784_v44, %s2394_s9  ;;  %s4279_s9 = scalar_lea.vmem %s4449_s5, %s2445_s22 }
 0x2a2   : > { %v1416_v46 = vpop.permute.xlu2 %1415 }
 0x2a3   : > { %v1414_v13 = vpop.permute.xlu1 %1413  ;;  %v1808_v7 = vsel %vm1804_vm10, %v3949_v59, %v1416_v46 }
 0x2a4   : > { %v1807_v56 = vsel %vm1804_vm10, %v3967_v38, %v1414_v13  ;;  %1437 = vrot.lane.b32.xlu0 %v4938_v17, %s2396_s11  ;;  %v4939_v38 = vld [vmem:[#allocation42_spill] sm:$0xff] }
 0x2a5   : > { %v1840_v33 = vsel %vm1837_vm11, %v1807_v56, %v1515_v18 }
 0x2a6   : > { %v1563_v27 = vpop.permute.xlu0 %1562  ;;  %2279 = vmatmul.msk.f32.gmra.mxu0 %vm1879_vm12, %v1840_v33 }
 0x2a7   : > { %v1864_v44 = vsel %vm1837_vm11, %v1831_v42, %v1563_v27 }
 0x2a8   : > { %2303 = vmatmul.msk.f32.gmra.mxu3 %vm1879_vm12, %v1864_v44  ;;  %1455 = vrot.lane.b32.xlu2 %v4939_v38, %s2396_s11 }
 0x2a9   : > { %1538 = vrot.lane.b32.xlu1 %v4940_v28, %s2395_s10 }
 0x2aa   : > { %v1364_v39 = vpop.permute.xlu2 %1363 }
 0x2ab   : > { %v1362_v35 = vpop.permute.xlu1 %1361  ;;  %v1800_v42 = vsel %vm1771_vm8, %v3882_v23, %v1364_v39  ;;  %v4273_v23 = vld [vmem:[%s4448_s4] ss:$0 sm:$0xff] }
 0x2ac   : > { %1522 = vrot.lane.b32.xlu0 %v4941_v31, %s2395_s10  ;;  %v1799_v18 = vsel %vm1771_vm8, %v3686_v41, %v1362_v35 }
 0x2ad   : > { %v1832_v22 = vsel %vm1804_vm10, %v1799_v18, %v1464_v32  ;;  %v4946_v32 = vld [vmem:[#allocation74_spill] sm:$0xff] }
 0x2ae   : > { %v1346_v21 = vpop.permute.xlu0 %1345 }
 0x2af   : > { %v1791_v41 = vsel %vm1771_vm8, %v3747_v30, %v1346_v21 }
 0x2b0   : > { %1572 = vrot.lane.b32.xlu2 %v1509_v2, %s2395_s10 }
 0x2b1   : > { %1556 = vrot.lane.b32.xlu1 %v4942_v40, %s2395_s10 }
 0x2b2   : > { %v1450_v58 = vpop.permute.xlu2 %1449 }
 0x2b3   : > { %v1448_v52 = vpop.permute.xlu1 %1447 }
 0x2b4   : > { %1471 = vrot.lane.b32.xlu0 %v1408_v49, %s2396_s11  ;;  %v1824_v0 = vsel %vm1804_vm10, %v1791_v41, %v1448_v52 }
 0x2b6   : > { %v1531_v10 = vpop.permute.xlu0 %1530 }
 0x2b7   : > { %v1848_v63 = vsel %vm1837_vm11, %v1815_v45, %v1531_v10 }
 0x2b8   : > { %2287 = vmatmul.msk.f32.gmra.mxu1 %vm1879_vm12, %v1848_v63  ;;  %1524 = vrot.lane.b32.xlu2 %v4943_v53, %s2395_s10 }
 0x2b9   : > { %1439 = vrot.lane.b32.xlu1 %v4944_v61, %s2396_s11 }
 0x2ba   : > { %v1567_v43 = vpop.permute.xlu2 %1566 }
 0x2bb   : > { %v1565_v57 = vpop.permute.xlu1 %1564 }
 0x2bc   : > { %1423 = vrot.lane.b32.xlu0 %v4945_v6, %s2396_s11  ;;  %v1865_v60 = vsel %vm1837_vm11, %v1832_v22, %v1565_v57 }
 0x2bd   : > { %2304 = vmatmul.msk.f32.gmra.mxu3 %vm1879_vm12, %v1865_v60 }
 0x2be   : > { %v1549_v48 = vpop.permute.xlu0 %1548 }
 0x2bf   : > { %v1857_v25 = vsel %vm1837_vm11, %v1824_v0, %v1549_v48 }
 0x2c0   : > { %2296 = vmatmul.msk.f32.gmra.mxu2 %vm1879_vm12, %v1857_v25 }
 0x2c2   : > { %v1350_v30 = vpop.permute.xlu2 %1349 }
 0x2c3   : > { %v1348_v62 = vpop.permute.xlu1 %1347  ;;  %v1793_v49 = vsel %vm1771_vm8, %v3612_v26, %v1350_v30 }
 0x2c4   : > { %1540 = vrot.lane.b32.xlu0 %v4946_v32, %s2395_s10  ;;  %v1792_v17 = vsel %vm1771_vm8, %v3733_v4, %v1348_v62 }
 0x2c6   : > { %v1432_v29 = vpop.permute.xlu0 %1431 }
 0x2c7   : > { %v1816_v15 = vsel %vm1804_vm10, %v4053_v19, %v1432_v29  ;;  %v1825_v19 = vsel %vm1804_vm10, %v1792_v17, %v1450_v58 }
 0x2ca   : > { %v1535_v59 = vpop.permute.xlu2 %1534 }
 0x2cb   : > { %v1533_v14 = vpop.permute.xlu1 %1532 }
 0x2cc   : > { %v1849_v12 = vsel %vm1837_vm11, %v1816_v15, %v1533_v14 }
 0x2cd   : > { %2288 = vmatmul.msk.f32.gmra.mxu1 %vm1879_vm12, %v1849_v12 }
 0x2ce   : > { %v1517_v13 = vpop.permute.xlu0 %1516 }
 0x2cf   : > { %v1841_v56 = vsel %vm1837_vm11, %v1808_v7, %v1517_v13 }
 0x2d0   : > { %2280 = vmatmul.msk.f32.gmra.mxu0 %vm1879_vm12, %v1841_v56 }
 0x2d2   : > { %v1553_v54 = vpop.permute.xlu2 %1552 }
 0x2d3   : > { %v1551_v16 = vpop.permute.xlu1 %1550 }
 0x2d4   : > { %v1858_v33 = vsel %vm1837_vm11, %v1825_v19, %v1551_v16 }
 0x2d5   : > { %2297 = vmatmul.msk.f32.gmra.mxu2 %vm1879_vm12, %v1858_v33 }
 0x2d6   : > { %v1466_v46 = vpop.permute.xlu0 %1465 }
 0x2d7   : > { %v1833_v27 = vsel %vm1804_vm10, %v1800_v42, %v1466_v46 }
 0x2d8   : > { %v1866_v44 = vsel %vm1837_vm11, %v1833_v27, %v1567_v43 }
 0x2d9   : > { %2305 = vmatmul.msk.f32.gmra.mxu3 %vm1879_vm12, %v1866_v44 }
 0x2da   : > { %v1436_v21 = vpop.permute.xlu2 %1435 }
 0x2db   : > { %v1434_v4 = vpop.permute.xlu1 %1433  ;;  %v1818_v29 = vsel %vm1804_vm10, %v3944_v36, %v1436_v21 }
 0x2dc   : > { %v1817_v38 = vsel %vm1804_vm10, %v4044_v5, %v1434_v4 }
 0x2dd   : > { %v1850_v28 = vsel %vm1837_vm11, %v1817_v38, %v1535_v59 }
 0x2de   : > { %v1418_v55 = vpop.permute.xlu0 %1417  ;;  %2289 = vmatmul.msk.f32.gmra.mxu1 %vm1879_vm12, %v1850_v28 }
 0x2df   : > { %v1809_v31 = vsel %vm1804_vm10, %v3816_v1, %v1418_v55 }
 0x2e1   : > { %v2021_v35 = vpop.f32.mrf.mxu1 }
 0x2e2   : > { %v2022_v5 = vadd.f32 %v4273_v23, %v2021_v35  ;;  %v1521_v63 = vpop.permute.xlu2 %1520 }
 0x2e3   : > { %v1519_v3 = vpop.permute.xlu1 %1518 }
 0x2e4   : > { %2101 = vst.msk [vmem:[%s4279_s9 + $0x40] sm:$0xff] %vm1606_vm3, %v2022_v5  ;;  %v1842_v2 = vsel %vm1837_vm11, %v1809_v31, %v1519_v3 }
 0x2e5   : > { %2281 = vmatmul.msk.f32.gmra.mxu0 %vm1879_vm12, %v1842_v2 }
 0x2e6   : > { %v1366_v39 = vpop.permute.xlu0 %1365 }
 0x2e7   : > { %v1801_v53 = vsel %vm1771_vm8, %v3865_v50, %v1366_v39 }
 0x2ea   : > { %v1470_v43 = vpop.permute.xlu2 %1469 }
 0x2eb   : > { %v1468_v40 = vpop.permute.xlu1 %1467 }
 0x2ec   : > { %v1834_v57 = vsel %vm1804_vm10, %v1801_v53, %v1468_v40 }
 0x2ee   : > { %v1452_v52 = vpop.permute.xlu0 %1451 }
 0x2ef   : > { %v1826_v45 = vsel %vm1804_vm10, %v1793_v49, %v1452_v52 }
 0x2f0   : > { %v1859_v10 = vsel %vm1837_vm11, %v1826_v45, %v1553_v54 }
 0x2f1   : > { %2298 = vmatmul.msk.f32.gmra.mxu2 %vm1879_vm12, %v1859_v10 }
 0x2f2   : > { %v1422_v30 = vpop.permute.xlu2 %1421 }
 0x2f3   : > { %v1420_v1 = vpop.permute.xlu1 %1419  ;;  %v1811_v35 = vsel %vm1804_vm10, %v3997_v11, %v1422_v30 }
 0x2f4   : > { %v1810_v18 = vsel %vm1804_vm10, %v4009_v34, %v1420_v1  ;;  %v2045_v58 = vpop.f32.mrf.mxu2 }
 0x2f5   : > { %v2046_v61 = vadd.f32 %v4273_v23, %v2045_v58  ;;  %v1843_v26 = vsel %vm1837_vm11, %v1810_v18, %v1521_v63 }
 0x2f6   : > { %v1569_v22 = vpop.permute.xlu0 %1568  ;;  %2282 = vmatmul.msk.f32.gmra.mxu0 %vm1879_vm12, %v1843_v26 }
 0x2f7   : > { %2109 = vst.msk [vmem:[%s4279_s9 + $0x80] sm:$0xff] %vm1606_vm3, %v2046_v61  ;;  %v1867_v34 = vsel %vm1837_vm11, %v1834_v57, %v1569_v22 }
 0x2f8   : > { %2306 = vmatmul.msk.f32.gmra.mxu3 %vm1879_vm12, %v1867_v34 }
 0x2f9   : > { %v2024_v6 = vpop.f32.mrf.mxu1 }
 0x2fa   : > { %v1997_v60 = vpop.f32.mrf.mxu0  ;;  %v2025_v50 = vadd.f32 %v4273_v23, %v2024_v6  ;;  %v1370_v42 = vpop.permute.xlu2 %1369 }
 0x2fb   : > { %v1998_v41 = vadd.f32 %v4273_v23, %v1997_v60  ;;  %v2069_v0 = vpop.f32.mrf.mxu3  ;;  %v1368_v48 = vpop.permute.xlu1 %1367 }
 0x2fc   : > { %2102 = vst.msk [vmem:[%s4279_s9 + $0x48] sm:$0xff] %vm1606_vm3, %v2025_v50  ;;  %v2070_v25 = vadd.f32 %v4273_v23, %v2069_v0  ;;  %v1802_v12 = vsel %vm1771_vm8, %v3728_v20, %v1368_v48 }
 0x2fd   : > { %2093 = vst.msk [vmem:[%s4279_s9] sm:$0xff] %vm1606_vm3, %v1998_v41  ;;  %v1835_v13 = vsel %vm1804_vm10, %v1802_v12, %v1470_v43 }
 0x2fe   : > { %2117 = vst.msk [vmem:[%s4279_s9 + $0xc0] sm:$0xff] %vm1606_vm3, %v2070_v25  ;;  %v1352_v62 = vpop.permute.xlu0 %1351 }
 0x2ff   : > { %v1794_v36 = vsel %vm1771_vm8, %v3791_v24, %v1352_v62 }
 0x302   : > { %v1456_v38 = vpop.permute.xlu2 %1455 }
 0x303   : > { %v1454_v32 = vpop.permute.xlu1 %1453 }
 0x304   : > { %v1827_v19 = vsel %vm1804_vm10, %v1794_v36, %v1454_v32 }
 0x306   : > { %v1537_v15 = vpop.permute.xlu0 %1536 }
 0x307   : > { %v1851_v14 = vsel %vm1837_vm11, %v1818_v29, %v1537_v15 }
 0x308   : > { %2290 = vmatmul.msk.f32.gmra.mxu1 %vm1879_vm12, %v1851_v14 }
 0x30a   : > { %v1573_v2 = vpop.permute.xlu2 %1572 }
 0x30b   : > { %v1571_v7 = vpop.permute.xlu1 %1570 }
 0x30c   : > { %v2048_v56 = vpop.f32.mrf.mxu2  ;;  %v1868_v17 = vsel %vm1837_vm11, %v1835_v13, %v1571_v7 }
 0x30d   : > { %v2049_v16 = vadd.f32 %v4273_v23, %v2048_v56  ;;  %2307 = vmatmul.msk.f32.gmra.mxu3 %vm1879_vm12, %v1868_v17 }
 0x30e   : > { %v1555_v20 = vpop.permute.xlu0 %1554 }
 0x30f   : > { %2110 = vst.msk [vmem:[%s4279_s9 + $0x88] sm:$0xff] %vm1606_vm3, %v2049_v16  ;;  %v1860_v33 = vsel %vm1837_vm11, %v1827_v19, %v1555_v20 }
 0x310   : > { %2299 = vmatmul.msk.f32.gmra.mxu2 %vm1879_vm12, %v1860_v33 }
 0x312   : > { %v2000_v59 = vpop.f32.mrf.mxu0  ;;  %v1525_v58 = vpop.permute.xlu2 %1524 }
 0x313   : > { %v2001_v46 = vadd.f32 %v4273_v23, %v2000_v59  ;;  %v2072_v27 = vpop.f32.mrf.mxu3  ;;  %v1354_v44 = vpop.permute.xlu1 %1353 }
 0x314   : > { %v2073_v24 = vadd.f32 %v4273_v23, %v2072_v27  ;;  %v1795_v3 = vsel %vm1771_vm8, %v3777_v8, %v1354_v44  ;;  %v1803_v8 = vsel %vm1771_vm8, %v3923_v37, %v1370_v42 }
 0x315   : > { %2094 = vst.msk [vmem:[%s4279_s9 + $0x8] sm:$0xff] %vm1606_vm3, %v2001_v46 }
 0x316   : > { %2118 = vst.msk [vmem:[%s4279_s9 + $0xc8] sm:$0xff] %vm1606_vm3, %v2073_v24  ;;  %v1438_v4 = vpop.permute.xlu0 %1437 }
 0x317   : > { %v1819_v28 = vsel %vm1804_vm10, %v4076_v9, %v1438_v4  ;;  %v1828_v9 = vsel %vm1804_vm10, %v1795_v3, %v1456_v38 }
 0x31b   : > { %v1539_v55 = vpop.permute.xlu1 %1538 }
 0x31c   : > { %v1852_v54 = vsel %vm1837_vm11, %v1819_v28, %v1539_v55 }
 0x31d   : > { %2291 = vmatmul.msk.f32.gmra.mxu1 %vm1879_vm12, %v1852_v54 }
 0x31e   : > { %v1523_v5 = vpop.permute.xlu0 %1522 }
 0x31f   : > { %v1844_v31 = vsel %vm1837_vm11, %v1811_v35, %v1523_v5 }
 0x320   : > { %2283 = vmatmul.msk.f32.gmra.mxu0 %vm1879_vm12, %v1844_v31 }
 0x323   : > { %v1557_v39 = vpop.permute.xlu1 %1556  ;;  %v2003_v21 = vpop.f32.mrf.mxu0 }
 0x324   : > { %v2004_v40 = vadd.f32 %v4273_v23, %v2003_v21  ;;  %v2051_v49 = vpop.f32.mrf.mxu2  ;;  %v1861_v11 = vsel %vm1837_vm11, %v1828_v9, %v1557_v39 }
 0x325   : > { %v2052_v52 = vadd.f32 %v4273_v23, %v2051_v49  ;;  %2300 = vmatmul.msk.f32.gmra.mxu2 %vm1879_vm12, %v1861_v11 }
 0x326   : > { %2095 = vst.msk [vmem:[%s4279_s9 + $0x10] sm:$0xff] %vm1606_vm3, %v2004_v40  ;;  %v1472_v45 = vpop.permute.xlu0 %1471 }
 0x327   : > { %2111 = vst.msk [vmem:[%s4279_s9 + $0x90] sm:$0xff] %vm1606_vm3, %v2052_v52  ;;  %v1836_v10 = vsel %vm1804_vm10, %v1803_v8, %v1472_v45 }
 0x328   : > { %v1869_v1 = vsel %vm1837_vm11, %v1836_v10, %v1573_v2 }
 0x329   : > { %2308 = vmatmul.msk.f32.gmra.mxu3 %vm1879_vm12, %v1869_v1 }
 0x32b   : > { %v2075_v63 = vpop.f32.mrf.mxu3  ;;  %v1440_v26 = vpop.permute.xlu1 %1439 }
 0x32c   : > { %v2076_v18 = vadd.f32 %v4273_v23, %v2075_v63  ;;  %v1820_v22 = vsel %vm1804_vm10, %v4064_v47, %v1440_v26 }
 0x32e   : > { %2119 = vst.msk [vmem:[%s4279_s9 + $0xd0] sm:$0xff] %vm1606_vm3, %v2076_v18  ;;  %v1424_v37 = vpop.permute.xlu0 %1423 }
 0x32f   : > { %v1812_v53 = vsel %vm1804_vm10, %v3860_v51, %v1424_v37 }
 0x330   : > { %v1845_v61 = vsel %vm1837_vm11, %v1812_v53, %v1525_v58 }
 0x331   : > { %2284 = vmatmul.msk.f32.gmra.mxu0 %vm1879_vm12, %v1845_v61 }
 0x335   : > { %v2027_v57 = vpop.f32.mrf.mxu1 }
 0x336   : > { %v2028_v34 = vadd.f32 %v4273_v23, %v2027_v57  ;;  %v1541_v6 = vpop.permute.xlu0 %1540 }
 0x337   : > { %v1853_v60 = vsel %vm1837_vm11, %v1820_v22, %v1541_v6 }
 0x338   : > { %2103 = vst.msk [vmem:[%s4279_s9 + $0x50] sm:$0xff] %vm1606_vm3, %v2028_v34  ;;  %2292 = vmatmul.msk.f32.gmra.mxu1 %vm1879_vm12, %v1853_v60 }
 0x340   : > { %v2078_v51 = vpop.f32.mrf.mxu3 }
 0x341   : > { %v2079_v50 = vadd.f32 %v4273_v23, %v2078_v51 }
 0x343   : > { %2120 = vst.msk [vmem:[%s4279_s9 + $0xd8] sm:$0xff] %vm1606_vm3, %v2079_v50  ;;  %v2054_v41 = vpop.f32.mrf.mxu2 }
 0x344   : > { %v2055_v47 = vadd.f32 %v4273_v23, %v2054_v41 }
 0x346   : > { %2112 = vst.msk [vmem:[%s4279_s9 + $0x98] sm:$0xff] %vm1606_vm3, %v2055_v47 }
 0x34a   : > { %v2030_v0 = vpop.f32.mrf.mxu1 }
 0x34b   : > { %v2031_v48 = vadd.f32 %v4273_v23, %v2030_v0 }
 0x34d   : > { %2104 = vst.msk [vmem:[%s4279_s9 + $0x58] sm:$0xff] %vm1606_vm3, %v2031_v48  ;;  %v2006_v25 = vpop.f32.mrf.mxu0 }
 0x34e   : > { %v2007_v43 = vadd.f32 %v4273_v23, %v2006_v25 }
 0x350   : > { %2096 = vst.msk [vmem:[%s4279_s9 + $0x18] sm:$0xff] %vm1606_vm3, %v2007_v43 }
 0x358   : > { %v2057_v62 = vpop.f32.mrf.mxu2 }
 0x359   : > { %v2058_v32 = vadd.f32 %v4273_v23, %v2057_v62 }
 0x35b   : > { %2113 = vst.msk [vmem:[%s4279_s9 + $0xa0] sm:$0xff] %vm1606_vm3, %v2058_v32  ;;  %v2033_v29 = vpop.f32.mrf.mxu1 }
 0x35c   : > { %v2034_v15 = vadd.f32 %v4273_v23, %v2033_v29  ;;  %v2081_v14 = vpop.f32.mrf.mxu3 }
 0x35d   : > { %v2082_v30 = vadd.f32 %v4273_v23, %v2081_v14 }
 0x35e   : > { %2105 = vst.msk [vmem:[%s4279_s9 + $0x60] sm:$0xff] %vm1606_vm3, %v2034_v15 }
 0x35f   : > { %2121 = vst.msk [vmem:[%s4279_s9 + $0xe0] sm:$0xff] %vm1606_vm3, %v2082_v30 }
 0x362   : > { %v2009_v12 = vpop.f32.mrf.mxu0 }
 0x363   : > { %v2010_v7 = vadd.f32 %v4273_v23, %v2009_v12 }
 0x365   : > { %2097 = vst.msk [vmem:[%s4279_s9 + $0x20] sm:$0xff] %vm1606_vm3, %v2010_v7 }
 0x373   : > { %v2012_v13 = vpop.f32.mrf.mxu0 }
 0x374   : > { %v2013_v56 = vadd.f32 %v4273_v23, %v2012_v13  ;;  %v2060_v17 = vpop.f32.mrf.mxu2 }
 0x375   : > { %v2061_v36 = vadd.f32 %v4273_v23, %v2060_v17 }
 0x376   : > { %2098 = vst.msk [vmem:[%s4279_s9 + $0x28] sm:$0xff] %vm1606_vm3, %v2013_v56 }
 0x377   : > { %2114 = vst.msk [vmem:[%s4279_s9 + $0xa8] sm:$0xff] %vm1606_vm3, %v2061_v36 }
 0x37b   : > { %v2084_v16 = vpop.f32.mrf.mxu3 }
 0x37c   : > { %v2085_v19 = vadd.f32 %v4273_v23, %v2084_v16 }
 0x37e   : > { %2122 = vst.msk [vmem:[%s4279_s9 + $0xe8] sm:$0xff] %vm1606_vm3, %v2085_v19 }
 0x385   : > { %v2036_v20 = vpop.f32.mrf.mxu1 }
 0x386   : > { %v2037_v33 = vadd.f32 %v4273_v23, %v2036_v20 }
 0x388   : > { %2106 = vst.msk [vmem:[%s4279_s9 + $0x68] sm:$0xff] %vm1606_vm3, %v2037_v33 }
 0x390   : > { %v2087_v42 = vpop.f32.mrf.mxu3 }
 0x391   : > { %v2088_v59 = vadd.f32 %v4273_v23, %v2087_v42 }
 0x393   : > { %2123 = vst.msk [vmem:[%s4279_s9 + $0xf0] sm:$0xff] %vm1606_vm3, %v2088_v59  ;;  %v2063_v46 = vpop.f32.mrf.mxu2 }
 0x394   : > { %v2064_v27 = vadd.f32 %v4273_v23, %v2063_v46 }
 0x396   : > { %2115 = vst.msk [vmem:[%s4279_s9 + $0xb0] sm:$0xff] %vm1606_vm3, %v2064_v27 }
 0x39a   : > { %v2039_v44 = vpop.f32.mrf.mxu1 }
 0x39b   : > { %v2040_v24 = vadd.f32 %v4273_v23, %v2039_v44 }
 0x39d   : > { %2107 = vst.msk [vmem:[%s4279_s9 + $0x70] sm:$0xff] %vm1606_vm3, %v2040_v24  ;;  %v2015_v4 = vpop.f32.mrf.mxu0 }
 0x39e   : > { %v2016_v38 = vadd.f32 %v4273_v23, %v2015_v4 }
 0x3a0   : > { %2099 = vst.msk [vmem:[%s4279_s9 + $0x30] sm:$0xff] %vm1606_vm3, %v2016_v38 }
 0x3a8   : > { %v2066_v28 = vpop.f32.mrf.mxu2 }
 0x3a9   : > { %v2067_v55 = vadd.f32 %v4273_v23, %v2066_v28 }
 0x3ab   : > { %2116 = vst.msk [vmem:[%s4279_s9 + $0xb8] sm:$0xff] %vm1606_vm3, %v2067_v55 }
 0x3ac   : > { %v2090_v54 = vpop.f32.mrf.mxu3 }
 0x3ad   : > { %v2091_v35 = vadd.f32 %v4273_v23, %v2090_v54 }
 0x3ae   : > { %v2018_v5 = vpop.f32.mrf.mxu0 }
 0x3af   : > { %2124 = vst.msk [vmem:[%s4279_s9 + $0xf8] sm:$0xff] %vm1606_vm3, %v2091_v35  ;;  %v2019_v31 = vadd.f32 %v4273_v23, %v2018_v5 }
 0x3b1   : > { %2100 = vst.msk [vmem:[%s4279_s9 + $0x38] sm:$0xff] %vm1606_vm3, %v2019_v31 }
 0x3b5   : > { %v2042_v3 = vpop.f32.mrf.mxu1 }
 0x3b6   : > { %v2043_v2 = vadd.f32 %v4273_v23, %v2042_v3 }
 0x3b8   : > { %2108 = vst.msk [vmem:[%s4279_s9 + $0x78] sm:$0xff] %vm1606_vm3, %v2043_v2 }
 0x3b9 PF: > { %s15_s20 = sadd.s32 1, %s2387_s20   ;;  %s4947_s18 = smov %s2383_s19 }
 0x3ba   : > { %p12_p5 = scmp.ge.s32.totalorder %s15_s20, 4   ;;  %s4948_s19 = smov %s4950_s21 }
 0x3bc   :  { %14 = sbr.rel (!%p12_p5) target bundleno = 2 (0x2), region = 76 }

</bundles_post_ra>
